<compile_context>
chip_gen: v7x
topology: tpu7x:2x2x1
jax: 0.10.0
libtpu: 0.0.40
codegen_flags: <defaults>
</compile_context>

<pallas_src>
import jax
import jax.numpy as jnp
from jax import lax
from jax.experimental import pallas as pl
from jax.experimental.pallas import tpu as pltpu

# ----- small config consistent with Simple_Classifier.__init__ -----
OUTPUT_SIZE = 16          # config.output_size
NOTE_SIZE   = 32          # config.note.size
ENC_SIZE    = 16          # config.encoder.size
NUM_HEAD    = 4           # config.num_attention_head
ATT_SIZE    = ENC_SIZE * 2
HEAD_SIZE   = ATT_SIZE // NUM_HEAD
SEQ_LEN     = 8
BATCH       = 1
H           = ENC_SIZE

# ----- packed parameter-slab layout (one (SLAB_ROWS, 128) f32 array) -----
R_W1   = 0                         # (OUTPUT_SIZE, NOTE_SIZE)
R_W2   = R_W1 + OUTPUT_SIZE        # 16,  (NOTE_SIZE, NOTE_SIZE)
R_W3   = R_W2 + NOTE_SIZE          # 48,  (NOTE_SIZE, ENC_SIZE)
R_WATT = R_W3 + NOTE_SIZE          # 80,  (ATT_SIZE, ATT_SIZE)
R_CV   = R_WATT + ATT_SIZE         # 112, (ATT_SIZE, NUM_HEAD) block-diag ctx vecs
R_EXP  = R_CV + ATT_SIZE           # 144, (NUM_HEAD, ATT_SIZE) head-expansion
R_WI   = R_EXP + 8                 # 152, (ENC_SIZE, 8H) biLSTM input proj
R_WH   = R_WI + ENC_SIZE           # 168, (2H, 8H)       biLSTM recurrent (blockdiag)
R_B1   = R_WH + 2 * ENC_SIZE       # 200
R_B2   = R_B1 + 1                  # 201
R_B3   = R_B2 + 1                  # 202
R_BATT = R_B3 + 1                  # 203
R_BALL = R_BATT + 1                # 204
SLAB_ROWS = 208
SLAB_COLS = 128


# ---------------------------------------------------------------------------
# Single fused kernel (runs once, no grid):
#   MLP -> biLSTM -> ContextAttention for BOTH branches at once.
# x rows are time-major interleaved: row 2*t + b   (b=0: e1/original, b=1: eN).
# ---------------------------------------------------------------------------
def _classifier_kernel(x_ref, p_ref, o_ref, enc_ref):
    T = x_ref.shape[0] // 2

    # ---- parameter slices out of the single packed slab ----
    w1    = p_ref[R_W1:R_W1 + OUTPUT_SIZE, 0:NOTE_SIZE]
    w2    = p_ref[R_W2:R_W2 + NOTE_SIZE,   0:NOTE_SIZE]
    w3    = p_ref[R_W3:R_W3 + NOTE_SIZE,   0:ENC_SIZE]
    w_att = p_ref[R_WATT:R_WATT + ATT_SIZE, 0:ATT_SIZE]
    cv    = p_ref[R_CV:R_CV + ATT_SIZE,     0:NUM_HEAD]
    expand = p_ref[R_EXP:R_EXP + NUM_HEAD,  0:ATT_SIZE]
    wi    = p_ref[R_WI:R_WI + ENC_SIZE, :]
    wh    = p_ref[R_WH:R_WH + 2 * H,    :]
    b1    = p_ref[R_B1:R_B1 + 1,     0:NOTE_SIZE]
    b2    = p_ref[R_B2:R_B2 + 1,     0:NOTE_SIZE]
    b3    = p_ref[R_B3:R_B3 + 1,     0:ENC_SIZE]
    b_att = p_ref[R_BATT:R_BATT + 1, 0:ATT_SIZE]
    b_all = p_ref[R_BALL:R_BALL + 1, :]

    # ---- 1. performance_embedding_layer + performance_contractor ----
    # (Linear -> [Dropout=id] -> ReLU) x3, both branches stacked on sublanes.
    x = x_ref[...]                                                      # (2T, F)
    h = jnp.maximum(jnp.dot(x, w1, preferred_element_type=jnp.float32) + b1, 0.0)
    h = jnp.maximum(jnp.dot(h, w2, preferred_element_type=jnp.float32) + b2, 0.0)
    c_in = jnp.maximum(jnp.dot(h, w3, preferred_element_type=jnp.float32) + b3,
                       0.0)                                             # (2T, E)

    # ---- 2. performance_note_encoder: bidirectional LSTM ----
    # Gate columns: [i_f i_b | f_f f_b | o_f o_b | g_f g_b], each block H wide.
    xg = jnp.dot(c_in, wi, preferred_element_type=jnp.float32)          # (2T, 8H)

    # per-branch time reversal (row 2t+b -> 2(T-1-t)+b), built & applied ONCE
    r = lax.broadcasted_iota(jnp.int32, (2 * T, 2 * T), 0)
    c = lax.broadcasted_iota(jnp.int32, (2 * T, 2 * T), 1)
    rev = (c == (2 * (T - 1) - r + 2 * (r & 1))).astype(jnp.float32)
    xg_rev = jnp.dot(rev, xg, preferred_element_type=jnp.float32)       # (2T, 8H)

    lane = lax.broadcasted_iota(jnp.int32, (1, 8 * H), 1)
    fwd_lanes = (lane & (2 * H - 1)) < H                 # fwd half of each gate blk
    gx_all = jnp.where(fwd_lanes, xg, xg_rev) + b_all                    # (2T, 8H)

    h_st = jnp.zeros((2, 2 * H), jnp.float32)   # rows: branch; lanes [h_fwd|h_bwd]
    c_st = jnp.zeros((2, 2 * H), jnp.float32)
    for t in range(T):                           # fully unrolled (T static)
        tb = T - 1 - t
        gates = gx_all[2 * t:2 * t + 2, :] + jnp.dot(
            h_st, wh, preferred_element_type=jnp.float32)               # (2, 8H)
        sg  = jax.nn.sigmoid(gates[:, 0:6 * H])          # i, f, o lanes only
        g_g = jnp.tanh(gates[:, 6 * H:8 * H])            # g lanes only
        i_g = sg[:, 0:2 * H]
        f_g = sg[:, 2 * H:4 * H]
        o_g = sg[:, 4 * H:6 * H]
        c_st = f_g * c_st + i_g * g_g
        h_st = o_g * jnp.tanh(c_st)
        # fwd hidden belongs to time t, bwd hidden to time T-1-t
        enc_ref[2 * t:2 * t + 2,   0:H]     = h_st[:, 0:H]
        enc_ref[2 * tb:2 * tb + 2, H:2 * H] = h_st[:, H:2 * H]

    enc = enc_ref[...]                                                   # (2T, 2H)

    # ---- 3. performance_measure_attention: ContextAttention (head_size != 1) ----
    a = jnp.tanh(jnp.dot(enc, w_att, preferred_element_type=jnp.float32) + b_att)
    sims = jnp.dot(a, cv, preferred_element_type=jnp.float32)            # (2T, NH)
    m = jnp.max(jnp.max(sims, axis=1, keepdims=True), axis=0, keepdims=True)
    e = jnp.exp(sims - m)

    # branch selector matrices (even rows -> branch 0, odd rows -> branch 1)
    br = lax.broadcasted_iota(jnp.int32, (2, 2 * T), 0)
    jr = lax.broadcasted_iota(jnp.int32, (2, 2 * T), 1)
    sel = ((jr & 1) == br).astype(jnp.float32)                           # (2, 2T)
    jc = lax.broadcasted_iota(jnp.int32, (2 * T, 2), 0)
    bc = lax.broadcasted_iota(jnp.int32, (2 * T, 2), 1)
    sel_t = ((jc & 1) == bc).astype(jnp.float32)                         # (2T, 2)

    den = jnp.dot(sel, e, preferred_element_type=jnp.float32)            # (2, NH)
    den_rows = jnp.dot(sel_t, den, preferred_element_type=jnp.float32)   # (2T, NH)
    w = e / den_rows                                                      # softmax
    w_full = jnp.dot(w, expand, preferred_element_type=jnp.float32)      # (2T, 2H)
    out = jnp.dot(sel, w_full * enc, preferred_element_type=jnp.float32) # (2, 2H)
    o_ref[...] = out


@jax.jit
def classifier_forward(e1_input, eN_input, slab):
    # e*_input: (T, B, output_size), B == 1 (required by ContextAttention's bmm)
    T, B, F = e1_input.shape
    # time-major interleave: row 2*t + b  (b=0: e1, b=1: eN)
    x = jnp.stack([e1_input.reshape(T * B, F),
                   eN_input.reshape(T * B, F)], axis=1).reshape(2 * T * B, F)
    out = pl.pallas_call(
        _classifier_kernel,
        out_shape=jax.ShapeDtypeStruct((2, ATT_SIZE), jnp.float32),
        scratch_shapes=[pltpu.VMEM((2 * T, ATT_SIZE), jnp.float32)],
    )(x, slab)                                                           # (2, ATT)
    return out[0:1], out[1:2]


# ---------------------------------------------------------------------------
# Parameter construction (deterministic). Raw per-direction weights are kept
# for the pure-JAX reference; the fused / kernel-layout slab is built ONCE here.
# ---------------------------------------------------------------------------
def init_params(key):
    ks = jax.random.split(key, 16)

    def lin(kw, kb, fan_in, fan_out):
        bound = 1.0 / jnp.sqrt(fan_in)
        w = jax.random.uniform(kw, (fan_in, fan_out), jnp.float32, -bound, bound)
        b = jax.random.uniform(kb, (1, fan_out), jnp.float32, -bound, bound)
        return w, b

    p = {}
    # performance_embedding_layer: Linear(out->note), Linear(note->note)
    p["w1"], p["b1"] = lin(ks[0], ks[1], OUTPUT_SIZE, NOTE_SIZE)
    p["w2"], p["b2"] = lin(ks[2], ks[3], NOTE_SIZE, NOTE_SIZE)
    # performance_contractor: Linear(note->enc)
    p["w3"], p["b3"] = lin(ks[4], ks[5], NOTE_SIZE, ENC_SIZE)
    # bidirectional LSTM(enc -> enc); stored transposed (in, 4H), PyTorch gate
    # order i,f,g,o; biases are the combined (b_ih + b_hh).
    bound = 1.0 / jnp.sqrt(ENC_SIZE)
    u = lambda k, s: jax.random.uniform(k, s, jnp.float32, -bound, bound)
    p["wif"] = u(ks[6],  (ENC_SIZE, 4 * ENC_SIZE))
    p["whf"] = u(ks[7],  (ENC_SIZE, 4 * ENC_SIZE))
    p["bf"]  = u(ks[8],  (1, 4 * ENC_SIZE))
    p["wib"] = u(ks[9],  (ENC_SIZE, 4 * ENC_SIZE))
    p["whb"] = u(ks[10], (ENC_SIZE, 4 * ENC_SIZE))
    p["bb"]  = u(ks[11], (1, 4 * ENC_SIZE))
    # ContextAttention: Linear(att->att), context_vector ~ U(-1, 1)
    p["w_att"], p["b_att"] = lin(ks[12], ks[13], ATT_SIZE, ATT_SIZE)
    p["cv"] = jax.random.uniform(ks[14], (NUM_HEAD, HEAD_SIZE), jnp.float32,
                                 -1.0, 1.0)

    # --- kernel-layout LSTM weights: gate-major [i|f|o|g], [fwd|bwd] per block ---
    GATE_ORDER = (0, 1, 3, 2)        # PyTorch stores i,f,g,o -> kernel uses i,f,o,g
    wi_cols, b_cols = [], []
    for g in GATE_ORDER:
        wi_cols += [p["wif"][:, g * H:(g + 1) * H], p["wib"][:, g * H:(g + 1) * H]]
        b_cols  += [p["bf"][:, g * H:(g + 1) * H],  p["bb"][:, g * H:(g + 1) * H]]
    wi_all = jnp.concatenate(wi_cols, axis=1)                      # (E, 8H)
    b_all  = jnp.concatenate(b_cols,  axis=1)                      # (1, 8H)
    wh_big = jnp.zeros((2 * H, 8 * H), jnp.float32)                # block-diag
    for k, g in enumerate(GATE_ORDER):
        wh_big = wh_big.at[0:H, k * 2 * H:k * 2 * H + H].set(
            p["whf"][:, g * H:(g + 1) * H])
        wh_big = wh_big.at[H:2 * H, k * 2 * H + H:(k + 1) * 2 * H].set(
            p["whb"][:, g * H:(g + 1) * H])
    # block-diagonal context vectors and head-expansion matrix
    cv_blk = jnp.zeros((ATT_SIZE, NUM_HEAD), jnp.float32)
    expand = jnp.zeros((NUM_HEAD, ATT_SIZE), jnp.float32)
    for hh in range(NUM_HEAD):
        cv_blk = cv_blk.at[hh * HEAD_SIZE:(hh + 1) * HEAD_SIZE, hh].set(p["cv"][hh])
        expand = expand.at[hh, hh * HEAD_SIZE:(hh + 1) * HEAD_SIZE].set(1.0)

    # --- pack everything into ONE (SLAB_ROWS, 128) f32 slab (single DMA) ---
    slab = jnp.zeros((SLAB_ROWS, SLAB_COLS), jnp.float32)
    slab = slab.at[R_W1:R_W1 + OUTPUT_SIZE, 0:NOTE_SIZE].set(p["w1"])
    slab = slab.at[R_W2:R_W2 + NOTE_SIZE,   0:NOTE_SIZE].set(p["w2"])
    slab = slab.at[R_W3:R_W3 + NOTE_SIZE,   0:ENC_SIZE].set(p["w3"])
    slab = slab.at[R_WATT:R_WATT + ATT_SIZE, 0:ATT_SIZE].set(p["w_att"])
    slab = slab.at[R_CV:R_CV + ATT_SIZE,     0:NUM_HEAD].set(cv_blk)
    slab = slab.at[R_EXP:R_EXP + NUM_HEAD,   0:ATT_SIZE].set(expand)
    slab = slab.at[R_WI:R_WI + ENC_SIZE, :].set(wi_all)
    slab = slab.at[R_WH:R_WH + 2 * H,    :].set(wh_big)
    slab = slab.at[R_B1,   0:NOTE_SIZE].set(p["b1"][0])
    slab = slab.at[R_B2,   0:NOTE_SIZE].set(p["b2"][0])
    slab = slab.at[R_B3,   0:ENC_SIZE].set(p["b3"][0])
    slab = slab.at[R_BATT, 0:ATT_SIZE].set(p["b_att"][0])
    slab = slab.at[R_BALL, :].set(b_all[0])
    p["slab"] = slab
    return p


# ---------------------------------------------------------------------------
# Pure-JAX reference (uses the raw per-direction weights) for validation.
# ---------------------------------------------------------------------------
def _reference_forward(e1, eN, p):
    def mlp(x):
        h = jax.nn.relu(x @ p["w1"] + p["b1"])
        h = jax.nn.relu(h @ p["w2"] + p["b2"])
        return jax.nn.relu(h @ p["w3"] + p["b3"])

    def lstm_dir(xs, wi, wh, b, reverse):
        T = xs.shape[0]
        hcur = jnp.zeros((1, H), jnp.float32)
        ccur = jnp.zeros((1, H), jnp.float32)
        out = [None] * T
        idxs = range(T - 1, -1, -1) if reverse else range(T)
        for t in idxs:
            g = xs[t:t + 1] @ wi + hcur @ wh + b
            i = jax.nn.sigmoid(g[:, 0:H])
            f = jax.nn.sigmoid(g[:, H:2 * H])
            gg = jnp.tanh(g[:, 2 * H:3 * H])
            o = jax.nn.sigmoid(g[:, 3 * H:4 * H])
            ccur = f * ccur + i * gg
            hcur = o * jnp.tanh(ccur)
            out[t] = hcur
        return jnp.concatenate(out, axis=0)

    def attn(x):
        a = jnp.tanh(x @ p["w_att"] + p["b_att"])
        outs = []
        for hh in range(NUM_HEAD):
            lo, hi = hh * HEAD_SIZE, (hh + 1) * HEAD_SIZE
            sim = a[:, lo:hi] @ p["cv"][hh][:, None]          # (T, 1)
            wgt = jax.nn.softmax(sim, axis=0)
            outs.append(jnp.sum(wgt * x[:, lo:hi], axis=0, keepdims=True))
        return jnp.concatenate(outs, axis=-1)                 # (1, 2H)

    def branch(x):
        ct = mlp(x.reshape(-1, OUTPUT_SIZE))
        ef = lstm_dir(ct, p["wif"], p["whf"], p["bf"], False)
        eb = lstm_dir(ct, p["wib"], p["whb"], p["bb"], True)
        return attn(jnp.concatenate([ef, eb], axis=-1))

    return branch(e1), branch(eN)


if __name__ == "__main__":
    key = jax.random.PRNGKey(0)
    k_in1, k_in2, k_params = jax.random.split(key, 3)

    e1_input = jax.random.normal(k_in1, (SEQ_LEN, BATCH, OUTPUT_SIZE), jnp.float32)
    eN_input = jax.random.normal(k_in2, (SEQ_LEN, BATCH, OUTPUT_SIZE), jnp.float32)
    params = init_params(k_params)

    orig_m, perf_m = classifier_forward(e1_input, eN_input, params["slab"])
    jax.block_until_ready((orig_m, perf_m))
    assert orig_m.shape == (1, ATT_SIZE) and perf_m.shape == (1, ATT_SIZE)

    ref_o, ref_p = _reference_forward(e1_input, eN_input, params)
    assert jnp.allclose(orig_m, ref_o, rtol=2e-3, atol=2e-3)
    assert jnp.allclose(perf_m, ref_p, rtol=2e-3, atol=2e-3)
    print("KERNEL_OK")
</pallas_src>

<mosaic_0001>
module attributes {stable_mosaic.version = 11 : i64} {
  func.func @_classifier_kernel(%arg0: memref<16x16xf32, #tpu.memory_space<vmem>>, %arg1: memref<208x128xf32, #tpu.memory_space<vmem>>, %arg2: memref<2x32xf32, #tpu.memory_space<vmem>>, %arg3: memref<16x32xf32, #tpu.memory_space<vmem>>) attributes {dimension_semantics = [], scalar_prefetch = 0 : i64, scratch_operands = 1 : i64, tpu.core_type = #tpu.core_type<tc>} {
    %c0 = arith.constant 0 : index
    %c0_0 = arith.constant 0 : index
    %0 = vector.load %arg1[%c0, %c0_0] : memref<208x128xf32, #tpu.memory_space<vmem>>, vector<16x32xf32>
    %c16 = arith.constant 16 : index
    %c0_1 = arith.constant 0 : index
    %1 = vector.load %arg1[%c16, %c0_1] : memref<208x128xf32, #tpu.memory_space<vmem>>, vector<32x32xf32>
    %c48 = arith.constant 48 : index
    %c0_2 = arith.constant 0 : index
    %2 = vector.load %arg1[%c48, %c0_2] : memref<208x128xf32, #tpu.memory_space<vmem>>, vector<32x16xf32>
    %c80 = arith.constant 80 : index
    %c0_3 = arith.constant 0 : index
    %3 = vector.load %arg1[%c80, %c0_3] : memref<208x128xf32, #tpu.memory_space<vmem>>, vector<32x32xf32>
    %c112 = arith.constant 112 : index
    %c0_4 = arith.constant 0 : index
    %4 = vector.load %arg1[%c112, %c0_4] : memref<208x128xf32, #tpu.memory_space<vmem>>, vector<32x4xf32>
    %c144 = arith.constant 144 : index
    %c0_5 = arith.constant 0 : index
    %5 = vector.load %arg1[%c144, %c0_5] : memref<208x128xf32, #tpu.memory_space<vmem>>, vector<4x32xf32>
    %c152 = arith.constant 152 : index
    %c0_6 = arith.constant 0 : index
    %6 = vector.load %arg1[%c152, %c0_6] : memref<208x128xf32, #tpu.memory_space<vmem>>, vector<16x128xf32>
    %c168 = arith.constant 168 : index
    %c0_7 = arith.constant 0 : index
    %7 = vector.load %arg1[%c168, %c0_7] : memref<208x128xf32, #tpu.memory_space<vmem>>, vector<32x128xf32>
    %c200 = arith.constant 200 : index
    %c0_8 = arith.constant 0 : index
    %8 = vector.load %arg1[%c200, %c0_8] : memref<208x128xf32, #tpu.memory_space<vmem>>, vector<1x32xf32>
    %c201 = arith.constant 201 : index
    %c0_9 = arith.constant 0 : index
    %9 = vector.load %arg1[%c201, %c0_9] : memref<208x128xf32, #tpu.memory_space<vmem>>, vector<1x32xf32>
    %c202 = arith.constant 202 : index
    %c0_10 = arith.constant 0 : index
    %10 = vector.load %arg1[%c202, %c0_10] : memref<208x128xf32, #tpu.memory_space<vmem>>, vector<1x16xf32>
    %c203 = arith.constant 203 : index
    %c0_11 = arith.constant 0 : index
    %11 = vector.load %arg1[%c203, %c0_11] : memref<208x128xf32, #tpu.memory_space<vmem>>, vector<1x32xf32>
    %c204 = arith.constant 204 : index
    %c0_12 = arith.constant 0 : index
    %12 = vector.load %arg1[%c204, %c0_12] : memref<208x128xf32, #tpu.memory_space<vmem>>, vector<1x128xf32>
    %c0_13 = arith.constant 0 : index
    %c0_14 = arith.constant 0 : index
    %13 = vector.load %arg0[%c0_13, %c0_14] : memref<16x16xf32, #tpu.memory_space<vmem>>, vector<16x16xf32>
    %cst = arith.constant dense<0.000000e+00> : vector<16x32xf32>
    %14 = tpu.matmul %13, %0, %cst {dimension_numbers = #tpu.dot_dimension_numbers<[1], [0], [0], [1], [0, 0, 1, 1], [], []>} : vector<16x16xf32>, vector<16x32xf32>, vector<16x32xf32> -> vector<16x32xf32>
    %15 = vector.broadcast %8 : vector<1x32xf32> to vector<16x32xf32>
    %16 = arith.addf %14, %15 : vector<16x32xf32>
    %cst_15 = arith.constant 0.000000e+00 : f32
    %17 = vector.broadcast %cst_15 : f32 to vector<16x32xf32>
    %18 = arith.maximumf %16, %17 : vector<16x32xf32>
    %cst_16 = arith.constant dense<0.000000e+00> : vector<16x32xf32>
    %19 = tpu.matmul %18, %1, %cst_16 {dimension_numbers = #tpu.dot_dimension_numbers<[1], [0], [0], [1], [0, 0, 1, 1], [], []>} : vector<16x32xf32>, vector<32x32xf32>, vector<16x32xf32> -> vector<16x32xf32>
    %20 = vector.broadcast %9 : vector<1x32xf32> to vector<16x32xf32>
    %21 = arith.addf %19, %20 : vector<16x32xf32>
    %cst_17 = arith.constant 0.000000e+00 : f32
    %22 = vector.broadcast %cst_17 : f32 to vector<16x32xf32>
    %23 = arith.maximumf %21, %22 : vector<16x32xf32>
    %cst_18 = arith.constant dense<0.000000e+00> : vector<16x16xf32>
    %24 = tpu.matmul %23, %2, %cst_18 {dimension_numbers = #tpu.dot_dimension_numbers<[1], [0], [0], [1], [0, 0, 1, 1], [], []>} : vector<16x32xf32>, vector<32x16xf32>, vector<16x16xf32> -> vector<16x16xf32>
    %25 = vector.broadcast %10 : vector<1x16xf32> to vector<16x16xf32>
    %26 = arith.addf %24, %25 : vector<16x16xf32>
    %cst_19 = arith.constant 0.000000e+00 : f32
    %27 = vector.broadcast %cst_19 : f32 to vector<16x16xf32>
    %28 = arith.maximumf %26, %27 : vector<16x16xf32>
    %cst_20 = arith.constant dense<0.000000e+00> : vector<16x128xf32>
    %29 = tpu.matmul %28, %6, %cst_20 {dimension_numbers = #tpu.dot_dimension_numbers<[1], [0], [0], [1], [0, 0, 1, 1], [], []>} : vector<16x16xf32>, vector<16x128xf32>, vector<16x128xf32> -> vector<16x128xf32>
    %30 = tpu.iota {dimensions = array<i32: 0>} : vector<16x16xi32>
    %31 = tpu.iota {dimensions = array<i32: 1>} : vector<16x16xi32>
    %c14_i32 = arith.constant 14 : i32
    %32 = vector.broadcast %c14_i32 : i32 to vector<16x16xi32>
    %33 = arith.subi %32, %30 : vector<16x16xi32>
    %c1_i32 = arith.constant 1 : i32
    %34 = vector.broadcast %c1_i32 : i32 to vector<16x16xi32>
    %35 = arith.andi %30, %34 : vector<16x16xi32>
    %c2_i32 = arith.constant 2 : i32
    %36 = vector.broadcast %c2_i32 : i32 to vector<16x16xi32>
    %37 = arith.muli %36, %35 : vector<16x16xi32>
    %38 = arith.addi %33, %37 : vector<16x16xi32>
    %39 = arith.cmpi eq, %31, %38 : vector<16x16xi32>
    %40 = arith.extui %39 : vector<16x16xi1> to vector<16x16xi32>
    %41 = arith.sitofp %40 : vector<16x16xi32> to vector<16x16xf32>
    %cst_21 = arith.constant dense<0.000000e+00> : vector<16x128xf32>
    %42 = tpu.matmul %41, %29, %cst_21 {dimension_numbers = #tpu.dot_dimension_numbers<[1], [0], [0], [1], [0, 0, 1, 1], [], []>} : vector<16x16xf32>, vector<16x128xf32>, vector<16x128xf32> -> vector<16x128xf32>
    %43 = tpu.iota {dimensions = array<i32: 1>} : vector<1x128xi32>
    %c31_i32 = arith.constant 31 : i32
    %44 = vector.broadcast %c31_i32 : i32 to vector<1x128xi32>
    %45 = arith.andi %43, %44 : vector<1x128xi32>
    %c16_i32 = arith.constant 16 : i32
    %46 = vector.broadcast %c16_i32 : i32 to vector<1x128xi32>
    %47 = arith.cmpi slt, %45, %46 : vector<1x128xi32>
    %48 = vector.shape_cast %47 : vector<1x128xi1> to vector<1x128xi1>
    %49 = vector.broadcast %48 : vector<1x128xi1> to vector<16x128xi1>
    %50 = arith.select %49, %29, %42 : vector<16x128xi1>, vector<16x128xf32>
    %51 = vector.broadcast %12 : vector<1x128xf32> to vector<16x128xf32>
    %52 = arith.addf %50, %51 : vector<16x128xf32>
    %cst_22 = arith.constant 0.000000e+00 : f32
    %53 = vector.broadcast %cst_22 : f32 to vector<2x32xf32>
    %cst_23 = arith.constant 0.000000e+00 : f32
    %54 = vector.broadcast %cst_23 : f32 to vector<2x32xf32>
    %55 = vector.extract_strided_slice %52 {offsets = [0, 0], sizes = [2, 128], strides = [1, 1]} : vector<16x128xf32> to vector<2x128xf32>
    %cst_24 = arith.constant dense<0.000000e+00> : vector<2x128xf32>
    %56 = tpu.matmul %53, %7, %cst_24 {dimension_numbers = #tpu.dot_dimension_numbers<[1], [0], [0], [1], [0, 0, 1, 1], [], []>} : vector<2x32xf32>, vector<32x128xf32>, vector<2x128xf32> -> vector<2x128xf32>
    %57 = arith.addf %55, %56 : vector<2x128xf32>
    %58 = vector.extract_strided_slice %57 {offsets = [0, 0], sizes = [2, 96], strides = [1, 1]} : vector<2x128xf32> to vector<2x96xf32>
    %59 = arith.negf %58 : vector<2x96xf32>
    %60 = math.exp %59 : vector<2x96xf32>
    %cst_25 = arith.constant 1.000000e+00 : f32
    %61 = vector.broadcast %cst_25 : f32 to vector<2x96xf32>
    %62 = arith.addf %61, %60 : vector<2x96xf32>
    %63 = arith.divf %61, %62 : vector<2x96xf32>
    %64 = vector.extract_strided_slice %57 {offsets = [0, 96], sizes = [2, 32], strides = [1, 1]} : vector<2x128xf32> to vector<2x32xf32>
    %65 = math.tanh %64 : vector<2x32xf32>
    %66 = vector.extract_strided_slice %63 {offsets = [0, 0], sizes = [2, 32], strides = [1, 1]} : vector<2x96xf32> to vector<2x32xf32>
    %67 = vector.extract_strided_slice %63 {offsets = [0, 32], sizes = [2, 32], strides = [1, 1]} : vector<2x96xf32> to vector<2x32xf32>
    %68 = vector.extract_strided_slice %63 {offsets = [0, 64], sizes = [2, 32], strides = [1, 1]} : vector<2x96xf32> to vector<2x32xf32>
    %69 = arith.mulf %67, %54 : vector<2x32xf32>
    %70 = arith.mulf %66, %65 : vector<2x32xf32>
    %71 = arith.addf %69, %70 : vector<2x32xf32>
    %72 = math.tanh %71 : vector<2x32xf32>
    %73 = arith.mulf %68, %72 : vector<2x32xf32>
    %74 = vector.extract_strided_slice %73 {offsets = [0, 0], sizes = [2, 16], strides = [1, 1]} : vector<2x32xf32> to vector<2x16xf32>
    %c0_26 = arith.constant 0 : index
    %c0_27 = arith.constant 0 : index
    %75 = vector.load %arg3[%c0_26, %c0_27] : memref<16x32xf32, #tpu.memory_space<vmem>>, vector<2x16xf32>
    tpu.vector_store %arg3[%c0_26, %c0_27], %74 {strides = array<i32>} : memref<16x32xf32, #tpu.memory_space<vmem>>, vector<2x16xf32>,
    %76 = vector.extract_strided_slice %73 {offsets = [0, 16], sizes = [2, 16], strides = [1, 1]} : vector<2x32xf32> to vector<2x16xf32>
    %c14 = arith.constant 14 : index
    %c16_28 = arith.constant 16 : index
    %77 = vector.load %arg3[%c14, %c16_28] : memref<16x32xf32, #tpu.memory_space<vmem>>, vector<2x16xf32>
    tpu.vector_store %arg3[%c14, %c16_28], %76 {strides = array<i32>} : memref<16x32xf32, #tpu.memory_space<vmem>>, vector<2x16xf32>,
    %78 = vector.extract_strided_slice %52 {offsets = [2, 0], sizes = [2, 128], strides = [1, 1]} : vector<16x128xf32> to vector<2x128xf32>
    %cst_29 = arith.constant dense<0.000000e+00> : vector<2x128xf32>
    %79 = tpu.matmul %73, %7, %cst_29 {dimension_numbers = #tpu.dot_dimension_numbers<[1], [0], [0], [1], [0, 0, 1, 1], [], []>} : vector<2x32xf32>, vector<32x128xf32>, vector<2x128xf32> -> vector<2x128xf32>
    %80 = arith.addf %78, %79 : vector<2x128xf32>
    %81 = vector.extract_strided_slice %80 {offsets = [0, 0], sizes = [2, 96], strides = [1, 1]} : vector<2x128xf32> to vector<2x96xf32>
    %82 = arith.negf %81 : vector<2x96xf32>
    %83 = math.exp %82 : vector<2x96xf32>
    %cst_30 = arith.constant 1.000000e+00 : f32
    %84 = vector.broadcast %cst_30 : f32 to vector<2x96xf32>
    %85 = arith.addf %84, %83 : vector<2x96xf32>
    %86 = arith.divf %84, %85 : vector<2x96xf32>
    %87 = vector.extract_strided_slice %80 {offsets = [0, 96], sizes = [2, 32], strides = [1, 1]} : vector<2x128xf32> to vector<2x32xf32>
    %88 = math.tanh %87 : vector<2x32xf32>
    %89 = vector.extract_strided_slice %86 {offsets = [0, 0], sizes = [2, 32], strides = [1, 1]} : vector<2x96xf32> to vector<2x32xf32>
    %90 = vector.extract_strided_slice %86 {offsets = [0, 32], sizes = [2, 32], strides = [1, 1]} : vector<2x96xf32> to vector<2x32xf32>
    %91 = vector.extract_strided_slice %86 {offsets = [0, 64], sizes = [2, 32], strides = [1, 1]} : vector<2x96xf32> to vector<2x32xf32>
    %92 = arith.mulf %90, %71 : vector<2x32xf32>
    %93 = arith.mulf %89, %88 : vector<2x32xf32>
    %94 = arith.addf %92, %93 : vector<2x32xf32>
    %95 = math.tanh %94 : vector<2x32xf32>
    %96 = arith.mulf %91, %95 : vector<2x32xf32>
    %97 = vector.extract_strided_slice %96 {offsets = [0, 0], sizes = [2, 16], strides = [1, 1]} : vector<2x32xf32> to vector<2x16xf32>
    %c2 = arith.constant 2 : index
    %c0_31 = arith.constant 0 : index
    %98 = vector.load %arg3[%c2, %c0_31] : memref<16x32xf32, #tpu.memory_space<vmem>>, vector<2x16xf32>
    tpu.vector_store %arg3[%c2, %c0_31], %97 {strides = array<i32>} : memref<16x32xf32, #tpu.memory_space<vmem>>, vector<2x16xf32>,
    %99 = vector.extract_strided_slice %96 {offsets = [0, 16], sizes = [2, 16], strides = [1, 1]} : vector<2x32xf32> to vector<2x16xf32>
    %c12 = arith.constant 12 : index
    %c16_32 = arith.constant 16 : index
    %100 = vector.load %arg3[%c12, %c16_32] : memref<16x32xf32, #tpu.memory_space<vmem>>, vector<2x16xf32>
    tpu.vector_store %arg3[%c12, %c16_32], %99 {strides = array<i32>} : memref<16x32xf32, #tpu.memory_space<vmem>>, vector<2x16xf32>,
    %101 = vector.extract_strided_slice %52 {offsets = [4, 0], sizes = [2, 128], strides = [1, 1]} : vector<16x128xf32> to vector<2x128xf32>
    %cst_33 = arith.constant dense<0.000000e+00> : vector<2x128xf32>
    %102 = tpu.matmul %96, %7, %cst_33 {dimension_numbers = #tpu.dot_dimension_numbers<[1], [0], [0], [1], [0, 0, 1, 1], [], []>} : vector<2x32xf32>, vector<32x128xf32>, vector<2x128xf32> -> vector<2x128xf32>
    %103 = arith.addf %101, %102 : vector<2x128xf32>
    %104 = vector.extract_strided_slice %103 {offsets = [0, 0], sizes = [2, 96], strides = [1, 1]} : vector<2x128xf32> to vector<2x96xf32>
    %105 = arith.negf %104 : vector<2x96xf32>
    %106 = math.exp %105 : vector<2x96xf32>
    %cst_34 = arith.constant 1.000000e+00 : f32
    %107 = vector.broadcast %cst_34 : f32 to vector<2x96xf32>
    %108 = arith.addf %107, %106 : vector<2x96xf32>
    %109 = arith.divf %107, %108 : vector<2x96xf32>
    %110 = vector.extract_strided_slice %103 {offsets = [0, 96], sizes = [2, 32], strides = [1, 1]} : vector<2x128xf32> to vector<2x32xf32>
    %111 = math.tanh %110 : vector<2x32xf32>
    %112 = vector.extract_strided_slice %109 {offsets = [0, 0], sizes = [2, 32], strides = [1, 1]} : vector<2x96xf32> to vector<2x32xf32>
    %113 = vector.extract_strided_slice %109 {offsets = [0, 32], sizes = [2, 32], strides = [1, 1]} : vector<2x96xf32> to vector<2x32xf32>
    %114 = vector.extract_strided_slice %109 {offsets = [0, 64], sizes = [2, 32], strides = [1, 1]} : vector<2x96xf32> to vector<2x32xf32>
    %115 = arith.mulf %113, %94 : vector<2x32xf32>
    %116 = arith.mulf %112, %111 : vector<2x32xf32>
    %117 = arith.addf %115, %116 : vector<2x32xf32>
    %118 = math.tanh %117 : vector<2x32xf32>
    %119 = arith.mulf %114, %118 : vector<2x32xf32>
    %120 = vector.extract_strided_slice %119 {offsets = [0, 0], sizes = [2, 16], strides = [1, 1]} : vector<2x32xf32> to vector<2x16xf32>
    %c4 = arith.constant 4 : index
    %c0_35 = arith.constant 0 : index
    %121 = vector.load %arg3[%c4, %c0_35] : memref<16x32xf32, #tpu.memory_space<vmem>>, vector<2x16xf32>
    tpu.vector_store %arg3[%c4, %c0_35], %120 {strides = array<i32>} : memref<16x32xf32, #tpu.memory_space<vmem>>, vector<2x16xf32>,
    %122 = vector.extract_strided_slice %119 {offsets = [0, 16], sizes = [2, 16], strides = [1, 1]} : vector<2x32xf32> to vector<2x16xf32>
    %c10 = arith.constant 10 : index
    %c16_36 = arith.constant 16 : index
    %123 = vector.load %arg3[%c10, %c16_36] : memref<16x32xf32, #tpu.memory_space<vmem>>, vector<2x16xf32>
    tpu.vector_store %arg3[%c10, %c16_36], %122 {strides = array<i32>} : memref<16x32xf32, #tpu.memory_space<vmem>>, vector<2x16xf32>,
    %124 = vector.extract_strided_slice %52 {offsets = [6, 0], sizes = [2, 128], strides = [1, 1]} : vector<16x128xf32> to vector<2x128xf32>
    %cst_37 = arith.constant dense<0.000000e+00> : vector<2x128xf32>
    %125 = tpu.matmul %119, %7, %cst_37 {dimension_numbers = #tpu.dot_dimension_numbers<[1], [0], [0], [1], [0, 0, 1, 1], [], []>} : vector<2x32xf32>, vector<32x128xf32>, vector<2x128xf32> -> vector<2x128xf32>
    %126 = arith.addf %124, %125 : vector<2x128xf32>
    %127 = vector.extract_strided_slice %126 {offsets = [0, 0], sizes = [2, 96], strides = [1, 1]} : vector<2x128xf32> to vector<2x96xf32>
    %128 = arith.negf %127 : vector<2x96xf32>
    %129 = math.exp %128 : vector<2x96xf32>
    %cst_38 = arith.constant 1.000000e+00 : f32
    %130 = vector.broadcast %cst_38 : f32 to vector<2x96xf32>
    %131 = arith.addf %130, %129 : vector<2x96xf32>
    %132 = arith.divf %130, %131 : vector<2x96xf32>
    %133 = vector.extract_strided_slice %126 {offsets = [0, 96], sizes = [2, 32], strides = [1, 1]} : vector<2x128xf32> to vector<2x32xf32>
    %134 = math.tanh %133 : vector<2x32xf32>
    %135 = vector.extract_strided_slice %132 {offsets = [0, 0], sizes = [2, 32], strides = [1, 1]} : vector<2x96xf32> to vector<2x32xf32>
    %136 = vector.extract_strided_slice %132 {offsets = [0, 32], sizes = [2, 32], strides = [1, 1]} : vector<2x96xf32> to vector<2x32xf32>
    %137 = vector.extract_strided_slice %132 {offsets = [0, 64], sizes = [2, 32], strides = [1, 1]} : vector<2x96xf32> to vector<2x32xf32>
    %138 = arith.mulf %136, %117 : vector<2x32xf32>
    %139 = arith.mulf %135, %134 : vector<2x32xf32>
    %140 = arith.addf %138, %139 : vector<2x32xf32>
    %141 = math.tanh %140 : vector<2x32xf32>
    %142 = arith.mulf %137, %141 : vector<2x32xf32>
    %143 = vector.extract_strided_slice %142 {offsets = [0, 0], sizes = [2, 16], strides = [1, 1]} : vector<2x32xf32> to vector<2x16xf32>
    %c6 = arith.constant 6 : index
    %c0_39 = arith.constant 0 : index
    %144 = vector.load %arg3[%c6, %c0_39] : memref<16x32xf32, #tpu.memory_space<vmem>>, vector<2x16xf32>
    tpu.vector_store %arg3[%c6, %c0_39], %143 {strides = array<i32>} : memref<16x32xf32, #tpu.memory_space<vmem>>, vector<2x16xf32>,
    %145 = vector.extract_strided_slice %142 {offsets = [0, 16], sizes = [2, 16], strides = [1, 1]} : vector<2x32xf32> to vector<2x16xf32>
    %c8 = arith.constant 8 : index
    %c16_40 = arith.constant 16 : index
    %146 = vector.load %arg3[%c8, %c16_40] : memref<16x32xf32, #tpu.memory_space<vmem>>, vector<2x16xf32>
    tpu.vector_store %arg3[%c8, %c16_40], %145 {strides = array<i32>} : memref<16x32xf32, #tpu.memory_space<vmem>>, vector<2x16xf32>,
    %147 = vector.extract_strided_slice %52 {offsets = [8, 0], sizes = [2, 128], strides = [1, 1]} : vector<16x128xf32> to vector<2x128xf32>
    %cst_41 = arith.constant dense<0.000000e+00> : vector<2x128xf32>
    %148 = tpu.matmul %142, %7, %cst_41 {dimension_numbers = #tpu.dot_dimension_numbers<[1], [0], [0], [1], [0, 0, 1, 1], [], []>} : vector<2x32xf32>, vector<32x128xf32>, vector<2x128xf32> -> vector<2x128xf32>
    %149 = arith.addf %147, %148 : vector<2x128xf32>
    %150 = vector.extract_strided_slice %149 {offsets = [0, 0], sizes = [2, 96], strides = [1, 1]} : vector<2x128xf32> to vector<2x96xf32>
    %151 = arith.negf %150 : vector<2x96xf32>
    %152 = math.exp %151 : vector<2x96xf32>
    %cst_42 = arith.constant 1.000000e+00 : f32
    %153 = vector.broadcast %cst_42 : f32 to vector<2x96xf32>
    %154 = arith.addf %153, %152 : vector<2x96xf32>
    %155 = arith.divf %153, %154 : vector<2x96xf32>
    %156 = vector.extract_strided_slice %149 {offsets = [0, 96], sizes = [2, 32], strides = [1, 1]} : vector<2x128xf32> to vector<2x32xf32>
    %157 = math.tanh %156 : vector<2x32xf32>
    %158 = vector.extract_strided_slice %155 {offsets = [0, 0], sizes = [2, 32], strides = [1, 1]} : vector<2x96xf32> to vector<2x32xf32>
    %159 = vector.extract_strided_slice %155 {offsets = [0, 32], sizes = [2, 32], strides = [1, 1]} : vector<2x96xf32> to vector<2x32xf32>
    %160 = vector.extract_strided_slice %155 {offsets = [0, 64], sizes = [2, 32], strides = [1, 1]} : vector<2x96xf32> to vector<2x32xf32>
    %161 = arith.mulf %159, %140 : vector<2x32xf32>
    %162 = arith.mulf %158, %157 : vector<2x32xf32>
    %163 = arith.addf %161, %162 : vector<2x32xf32>
    %164 = math.tanh %163 : vector<2x32xf32>
    %165 = arith.mulf %160, %164 : vector<2x32xf32>
    %166 = vector.extract_strided_slice %165 {offsets = [0, 0], sizes = [2, 16], strides = [1, 1]} : vector<2x32xf32> to vector<2x16xf32>
    %c8_43 = arith.constant 8 : index
    %c0_44 = arith.constant 0 : index
    %167 = vector.load %arg3[%c8_43, %c0_44] : memref<16x32xf32, #tpu.memory_space<vmem>>, vector<2x16xf32>
    tpu.vector_store %arg3[%c8_43, %c0_44], %166 {strides = array<i32>} : memref<16x32xf32, #tpu.memory_space<vmem>>, vector<2x16xf32>,
    %168 = vector.extract_strided_slice %165 {offsets = [0, 16], sizes = [2, 16], strides = [1, 1]} : vector<2x32xf32> to vector<2x16xf32>
    %c6_45 = arith.constant 6 : index
    %c16_46 = arith.constant 16 : index
    %169 = vector.load %arg3[%c6_45, %c16_46] : memref<16x32xf32, #tpu.memory_space<vmem>>, vector<2x16xf32>
    tpu.vector_store %arg3[%c6_45, %c16_46], %168 {strides = array<i32>} : memref<16x32xf32, #tpu.memory_space<vmem>>, vector<2x16xf32>,
    %170 = vector.extract_strided_slice %52 {offsets = [10, 0], sizes = [2, 128], strides = [1, 1]} : vector<16x128xf32> to vector<2x128xf32>
    %cst_47 = arith.constant dense<0.000000e+00> : vector<2x128xf32>
    %171 = tpu.matmul %165, %7, %cst_47 {dimension_numbers = #tpu.dot_dimension_numbers<[1], [0], [0], [1], [0, 0, 1, 1], [], []>} : vector<2x32xf32>, vector<32x128xf32>, vector<2x128xf32> -> vector<2x128xf32>
    %172 = arith.addf %170, %171 : vector<2x128xf32>
    %173 = vector.extract_strided_slice %172 {offsets = [0, 0], sizes = [2, 96], strides = [1, 1]} : vector<2x128xf32> to vector<2x96xf32>
    %174 = arith.negf %173 : vector<2x96xf32>
    %175 = math.exp %174 : vector<2x96xf32>
    %cst_48 = arith.constant 1.000000e+00 : f32
    %176 = vector.broadcast %cst_48 : f32 to vector<2x96xf32>
    %177 = arith.addf %176, %175 : vector<2x96xf32>
    %178 = arith.divf %176, %177 : vector<2x96xf32>
    %179 = vector.extract_strided_slice %172 {offsets = [0, 96], sizes = [2, 32], strides = [1, 1]} : vector<2x128xf32> to vector<2x32xf32>
    %180 = math.tanh %179 : vector<2x32xf32>
    %181 = vector.extract_strided_slice %178 {offsets = [0, 0], sizes = [2, 32], strides = [1, 1]} : vector<2x96xf32> to vector<2x32xf32>
    %182 = vector.extract_strided_slice %178 {offsets = [0, 32], sizes = [2, 32], strides = [1, 1]} : vector<2x96xf32> to vector<2x32xf32>
    %183 = vector.extract_strided_slice %178 {offsets = [0, 64], sizes = [2, 32], strides = [1, 1]} : vector<2x96xf32> to vector<2x32xf32>
    %184 = arith.mulf %182, %163 : vector<2x32xf32>
    %185 = arith.mulf %181, %180 : vector<2x32xf32>
    %186 = arith.addf %184, %185 : vector<2x32xf32>
    %187 = math.tanh %186 : vector<2x32xf32>
    %188 = arith.mulf %183, %187 : vector<2x32xf32>
    %189 = vector.extract_strided_slice %188 {offsets = [0, 0], sizes = [2, 16], strides = [1, 1]} : vector<2x32xf32> to vector<2x16xf32>
    %c10_49 = arith.constant 10 : index
    %c0_50 = arith.constant 0 : index
    %190 = vector.load %arg3[%c10_49, %c0_50] : memref<16x32xf32, #tpu.memory_space<vmem>>, vector<2x16xf32>
    tpu.vector_store %arg3[%c10_49, %c0_50], %189 {strides = array<i32>} : memref<16x32xf32, #tpu.memory_space<vmem>>, vector<2x16xf32>,
    %191 = vector.extract_strided_slice %188 {offsets = [0, 16], sizes = [2, 16], strides = [1, 1]} : vector<2x32xf32> to vector<2x16xf32>
    %c4_51 = arith.constant 4 : index
    %c16_52 = arith.constant 16 : index
    %192 = vector.load %arg3[%c4_51, %c16_52] : memref<16x32xf32, #tpu.memory_space<vmem>>, vector<2x16xf32>
    tpu.vector_store %arg3[%c4_51, %c16_52], %191 {strides = array<i32>} : memref<16x32xf32, #tpu.memory_space<vmem>>, vector<2x16xf32>,
    %193 = vector.extract_strided_slice %52 {offsets = [12, 0], sizes = [2, 128], strides = [1, 1]} : vector<16x128xf32> to vector<2x128xf32>
    %cst_53 = arith.constant dense<0.000000e+00> : vector<2x128xf32>
    %194 = tpu.matmul %188, %7, %cst_53 {dimension_numbers = #tpu.dot_dimension_numbers<[1], [0], [0], [1], [0, 0, 1, 1], [], []>} : vector<2x32xf32>, vector<32x128xf32>, vector<2x128xf32> -> vector<2x128xf32>
    %195 = arith.addf %193, %194 : vector<2x128xf32>
    %196 = vector.extract_strided_slice %195 {offsets = [0, 0], sizes = [2, 96], strides = [1, 1]} : vector<2x128xf32> to vector<2x96xf32>
    %197 = arith.negf %196 : vector<2x96xf32>
    %198 = math.exp %197 : vector<2x96xf32>
    %cst_54 = arith.constant 1.000000e+00 : f32
    %199 = vector.broadcast %cst_54 : f32 to vector<2x96xf32>
    %200 = arith.addf %199, %198 : vector<2x96xf32>
    %201 = arith.divf %199, %200 : vector<2x96xf32>
    %202 = vector.extract_strided_slice %195 {offsets = [0, 96], sizes = [2, 32], strides = [1, 1]} : vector<2x128xf32> to vector<2x32xf32>
    %203 = math.tanh %202 : vector<2x32xf32>
    %204 = vector.extract_strided_slice %201 {offsets = [0, 0], sizes = [2, 32], strides = [1, 1]} : vector<2x96xf32> to vector<2x32xf32>
    %205 = vector.extract_strided_slice %201 {offsets = [0, 32], sizes = [2, 32], strides = [1, 1]} : vector<2x96xf32> to vector<2x32xf32>
    %206 = vector.extract_strided_slice %201 {offsets = [0, 64], sizes = [2, 32], strides = [1, 1]} : vector<2x96xf32> to vector<2x32xf32>
    %207 = arith.mulf %205, %186 : vector<2x32xf32>
    %208 = arith.mulf %204, %203 : vector<2x32xf32>
    %209 = arith.addf %207, %208 : vector<2x32xf32>
    %210 = math.tanh %209 : vector<2x32xf32>
    %211 = arith.mulf %206, %210 : vector<2x32xf32>
    %212 = vector.extract_strided_slice %211 {offsets = [0, 0], sizes = [2, 16], strides = [1, 1]} : vector<2x32xf32> to vector<2x16xf32>
    %c12_55 = arith.constant 12 : index
    %c0_56 = arith.constant 0 : index
    %213 = vector.load %arg3[%c12_55, %c0_56] : memref<16x32xf32, #tpu.memory_space<vmem>>, vector<2x16xf32>
    tpu.vector_store %arg3[%c12_55, %c0_56], %212 {strides = array<i32>} : memref<16x32xf32, #tpu.memory_space<vmem>>, vector<2x16xf32>,
    %214 = vector.extract_strided_slice %211 {offsets = [0, 16], sizes = [2, 16], strides = [1, 1]} : vector<2x32xf32> to vector<2x16xf32>
    %c2_57 = arith.constant 2 : index
    %c16_58 = arith.constant 16 : index
    %215 = vector.load %arg3[%c2_57, %c16_58] : memref<16x32xf32, #tpu.memory_space<vmem>>, vector<2x16xf32>
    tpu.vector_store %arg3[%c2_57, %c16_58], %214 {strides = array<i32>} : memref<16x32xf32, #tpu.memory_space<vmem>>, vector<2x16xf32>,
    %216 = vector.extract_strided_slice %52 {offsets = [14, 0], sizes = [2, 128], strides = [1, 1]} : vector<16x128xf32> to vector<2x128xf32>
    %cst_59 = arith.constant dense<0.000000e+00> : vector<2x128xf32>
    %217 = tpu.matmul %211, %7, %cst_59 {dimension_numbers = #tpu.dot_dimension_numbers<[1], [0], [0], [1], [0, 0, 1, 1], [], []>} : vector<2x32xf32>, vector<32x128xf32>, vector<2x128xf32> -> vector<2x128xf32>
    %218 = arith.addf %216, %217 : vector<2x128xf32>
    %219 = vector.extract_strided_slice %218 {offsets = [0, 0], sizes = [2, 96], strides = [1, 1]} : vector<2x128xf32> to vector<2x96xf32>
    %220 = arith.negf %219 : vector<2x96xf32>
    %221 = math.exp %220 : vector<2x96xf32>
    %cst_60 = arith.constant 1.000000e+00 : f32
    %222 = vector.broadcast %cst_60 : f32 to vector<2x96xf32>
    %223 = arith.addf %222, %221 : vector<2x96xf32>
    %224 = arith.divf %222, %223 : vector<2x96xf32>
    %225 = vector.extract_strided_slice %218 {offsets = [0, 96], sizes = [2, 32], strides = [1, 1]} : vector<2x128xf32> to vector<2x32xf32>
    %226 = math.tanh %225 : vector<2x32xf32>
    %227 = vector.extract_strided_slice %224 {offsets = [0, 0], sizes = [2, 32], strides = [1, 1]} : vector<2x96xf32> to vector<2x32xf32>
    %228 = vector.extract_strided_slice %224 {offsets = [0, 32], sizes = [2, 32], strides = [1, 1]} : vector<2x96xf32> to vector<2x32xf32>
    %229 = vector.extract_strided_slice %224 {offsets = [0, 64], sizes = [2, 32], strides = [1, 1]} : vector<2x96xf32> to vector<2x32xf32>
    %230 = arith.mulf %228, %209 : vector<2x32xf32>
    %231 = arith.mulf %227, %226 : vector<2x32xf32>
    %232 = arith.addf %230, %231 : vector<2x32xf32>
    %233 = math.tanh %232 : vector<2x32xf32>
    %234 = arith.mulf %229, %233 : vector<2x32xf32>
    %235 = vector.extract_strided_slice %234 {offsets = [0, 0], sizes = [2, 16], strides = [1, 1]} : vector<2x32xf32> to vector<2x16xf32>
    %c14_61 = arith.constant 14 : index
    %c0_62 = arith.constant 0 : index
    %236 = vector.load %arg3[%c14_61, %c0_62] : memref<16x32xf32, #tpu.memory_space<vmem>>, vector<2x16xf32>
    tpu.vector_store %arg3[%c14_61, %c0_62], %235 {strides = array<i32>} : memref<16x32xf32, #tpu.memory_space<vmem>>, vector<2x16xf32>,
    %237 = vector.extract_strided_slice %234 {offsets = [0, 16], sizes = [2, 16], strides = [1, 1]} : vector<2x32xf32> to vector<2x16xf32>
    %c0_63 = arith.constant 0 : index
    %c16_64 = arith.constant 16 : index
    %238 = vector.load %arg3[%c0_63, %c16_64] : memref<16x32xf32, #tpu.memory_space<vmem>>, vector<2x16xf32>
    tpu.vector_store %arg3[%c0_63, %c16_64], %237 {strides = array<i32>} : memref<16x32xf32, #tpu.memory_space<vmem>>, vector<2x16xf32>,
    %c0_65 = arith.constant 0 : index
    %c0_66 = arith.constant 0 : index
    %239 = vector.load %arg3[%c0_65, %c0_66] : memref<16x32xf32, #tpu.memory_space<vmem>>, vector<16x32xf32>
    %cst_67 = arith.constant dense<0.000000e+00> : vector<16x32xf32>
    %240 = tpu.matmul %239, %3, %cst_67 {dimension_numbers = #tpu.dot_dimension_numbers<[1], [0], [0], [1], [0, 0, 1, 1], [], []>} : vector<16x32xf32>, vector<32x32xf32>, vector<16x32xf32> -> vector<16x32xf32>
    %241 = vector.broadcast %11 : vector<1x32xf32> to vector<16x32xf32>
    %242 = arith.addf %240, %241 : vector<16x32xf32>
    %243 = math.tanh %242 : vector<16x32xf32>
    %cst_68 = arith.constant dense<0.000000e+00> : vector<16x4xf32>
    %244 = tpu.matmul %243, %4, %cst_68 {dimension_numbers = #tpu.dot_dimension_numbers<[1], [0], [0], [1], [0, 0, 1, 1], [], []>} : vector<16x32xf32>, vector<32x4xf32>, vector<16x4xf32> -> vector<16x4xf32>
    %cst_69 = arith.constant dense<0xFF800000> : vector<16xf32>
    %245 = vector.multi_reduction <maximumf>, %244, %cst_69 [1] : vector<16x4xf32> to vector<16xf32>
    %246 = vector.shape_cast %245 : vector<16xf32> to vector<16x1xf32>
    %cst_70 = arith.constant dense<0xFF800000> : vector<1xf32>
    %247 = vector.multi_reduction <maximumf>, %246, %cst_70 [0] : vector<16x1xf32> to vector<1xf32>
    %248 = vector.shape_cast %247 : vector<1xf32> to vector<1x1xf32>
    %249 = vector.broadcast %248 : vector<1x1xf32> to vector<16x4xf32>
    %250 = arith.subf %244, %249 : vector<16x4xf32>
    %251 = math.exp %250 : vector<16x4xf32>
    %252 = tpu.iota {dimensions = array<i32: 0>} : vector<2x16xi32>
    %253 = tpu.iota {dimensions = array<i32: 1>} : vector<2x16xi32>
    %c1_i32_71 = arith.constant 1 : i32
    %254 = vector.broadcast %c1_i32_71 : i32 to vector<2x16xi32>
    %255 = arith.andi %253, %254 : vector<2x16xi32>
    %256 = arith.cmpi eq, %255, %252 : vector<2x16xi32>
    %257 = arith.extui %256 : vector<2x16xi1> to vector<2x16xi32>
    %258 = arith.sitofp %257 : vector<2x16xi32> to vector<2x16xf32>
    %259 = tpu.iota {dimensions = array<i32: 0>} : vector<16x2xi32>
    %260 = tpu.iota {dimensions = array<i32: 1>} : vector<16x2xi32>
    %c1_i32_72 = arith.constant 1 : i32
    %261 = vector.broadcast %c1_i32_72 : i32 to vector<16x2xi32>
    %262 = arith.andi %259, %261 : vector<16x2xi32>
    %263 = arith.cmpi eq, %262, %260 : vector<16x2xi32>
    %264 = arith.extui %263 : vector<16x2xi1> to vector<16x2xi32>
    %265 = arith.sitofp %264 : vector<16x2xi32> to vector<16x2xf32>
    %cst_73 = arith.constant dense<0.000000e+00> : vector<2x4xf32>
    %266 = tpu.matmul %258, %251, %cst_73 {dimension_numbers = #tpu.dot_dimension_numbers<[1], [0], [0], [1], [0, 0, 1, 1], [], []>} : vector<2x16xf32>, vector<16x4xf32>, vector<2x4xf32> -> vector<2x4xf32>
    %cst_74 = arith.constant dense<0.000000e+00> : vector<16x4xf32>
    %267 = tpu.matmul %265, %266, %cst_74 {dimension_numbers = #tpu.dot_dimension_numbers<[1], [0], [0], [1], [0, 0, 1, 1], [], []>} : vector<16x2xf32>, vector<2x4xf32>, vector<16x4xf32> -> vector<16x4xf32>
    %268 = arith.divf %251, %267 : vector<16x4xf32>
    %cst_75 = arith.constant dense<0.000000e+00> : vector<16x32xf32>
    %269 = tpu.matmul %268, %5, %cst_75 {dimension_numbers = #tpu.dot_dimension_numbers<[1], [0], [0], [1], [0, 0, 1, 1], [], []>} : vector<16x4xf32>, vector<4x32xf32>, vector<16x32xf32> -> vector<16x32xf32>
    %270 = arith.mulf %269, %239 : vector<16x32xf32>
    %cst_76 = arith.constant dense<0.000000e+00> : vector<2x32xf32>
    %271 = tpu.matmul %258, %270, %cst_76 {dimension_numbers = #tpu.dot_dimension_numbers<[1], [0], [0], [1], [0, 0, 1, 1], [], []>} : vector<2x16xf32>, vector<16x32xf32>, vector<2x32xf32> -> vector<2x32xf32>
    %c0_77 = arith.constant 0 : index
    %c0_78 = arith.constant 0 : index
    %272 = vector.load %arg2[%c0_77, %c0_78] : memref<2x32xf32, #tpu.memory_space<vmem>>, vector<2x32xf32>
    tpu.vector_store %arg2[%c0_77, %c0_78], %271 {strides = array<i32>} : memref<2x32xf32, #tpu.memory_space<vmem>>, vector<2x32xf32>,
    return
  }
}

</mosaic_0001>

<bundles_post_ra>
// kernel: classifier_forward.1
= control target key start
LH: loop header
LB: loop body
LE: loop exit
PB: predicated region body
PF: predicated region fallthrough
CT: control target
= control target key end

     0   :  { %7 = vsyncpa [#allocation4], 0  ;;  %s2445_s9 = smov [#allocation3]   ;;  %s2700_s0 = inlined_call_operand.vmem [shape: f32[16,16], index: 0, kind: input, shape index: {}]   ;;  %s2701_s1 = inlined_call_operand.hbm [shape: f32[208,128], index: 1, kind: input, shape index: {}]   ;;  %s2702_s2 = inlined_call_operand.vmem [shape: f32[2,32], index: 2, kind: output, shape index: {}]  }
   0x1   :  { %s15_s10 = sshll.u32 %s2445_s9, 4  ;;  %s2421_s13 = scalar_lea.hbm %s2701_s1, 3328  ;;  %s16_s10 = int_to_ptr.vmem [resolvable:$true] %s15_s10 }
   0x2   :  { %p2422_p0 = scmp.ne.s32.totalorder %s2701_s1, %s2421_s13  ;;  %p2425_p1 = scmp.lt.u32.totalorder %s2421_s13, %s2701_s1 }
   0x4   :  { %p2427_p2 = pnand %p2425_p1, %p2422_p0 }
   0x6   :  { %2430 = shalt.err (!%p2427_p2)
}
   0x7   :  { %s2431_s18 = scalar_lea.vmem %s16_s10, 3328  ;;  %p2436_p4 = scmp.lt.s32.totalorder %s16_s10, %s16_s10 }
   0x8   :  { %p2432_p3 = scmp.ne.s32.totalorder %s16_s10, %s2431_s18  ;;  %p2437_p5 = scmp.lt.s32.totalorder %s2431_s18, %s2431_s18 }
   0xa   :  { %p2438_p6 = por %p2437_p5, %p2436_p4 }
   0xc   :  { %p2439_p7 = pnand %p2438_p6, %p2432_p3 }
   0xe   :  { %2442 = shalt.err (!%p2439_p7)
}
   0xf   :  { %s2446_s19 = smov 128   ;;  %s2447_s20 = smov 8  }
  0x10   :  { %21 = dma.hbm_to_vmem [thread:$0]  %s2701_s1, 3328, %s16_s10, [#allocation4], %s2446_s19, %s2446_s19, %s2447_s20  }
  0x11   :  { %2443 = dma.done.wait [#allocation4], 3328  }
  0x12   :  { %2444 = vsyncadd [#allocation4], 4294963968  ;;  %vm61_vm0 = vcmask 130048   ;;  %v25_v0 = vld [vmem:[#allocation3] sm:$0xff]  ;;  %v26_v1 = vld [vmem:[#allocation3 + $0x8] sm:$0xff]  ;;  %vm149_vm1 = vcmask 261120   ;;  %v401_v41 = vlaneseq }
  0x13   :  { %v55_v2 = vld [vmem:[%s2700_s0] sm:$0xff]  ;;  %v2239_v3 = vpack.c.bf16 %v26_v1, %v25_v0  ;;  %v27_v4 = vld [vmem:[#allocation3 + $0x10] sm:$0xff]  ;;  %v28_v5 = vld [vmem:[#allocation3 + $0x18] sm:$0xff]  ;;  %v2448_v49 = vmov 0.0|0.0   ;;  %v2449_v54 = vmov 0.0   ;;  %vm2450_vm3 = vmmov 0  }
  0x14   :  { %2066 = vmatprep.mubr.msk.f32.mxu0 %vm61_vm0, %v55_v2  ;;  %v2243_v6 = vpack.c.bf16 %v28_v5, %v27_v4  ;;  %v56_v7 = vld [vmem:[%s2700_s0 + $0x8] sm:$0xff]  ;;  %v29_v8 = vld [vmem:[#allocation3 + $0x20] sm:$0xff]  ;;  %v31_v11 = vld [vmem:[#allocation3 + $0x30] sm:$0xff]  ;;  %v2494_v42 = vshrl.u32 %v401_v41, 7  ;;  %v2503_v50 = vand.u32 127, %v401_v41  ;;  %s2451_s0 = smov 32  }
  0x15   :  { %2240 = vmatprep.subr.bf16.mxu0 %v2239_v3  ;;  %v30_v9 = vld [vmem:[#allocation3 + $0x28] sm:$0xff]  ;;  %v32_v12 = vld [vmem:[#allocation3 + $0x38] sm:$0xff]  ;;  %v33_v21 = vld [vmem:[#allocation3 + $0x40] sm:$0xff]  ;;  %s2452_s1 = smov 64   ;;  %vm615_vm6 = vcmask 123904   ;;  %vm617_vm7 = vcmask 255104  }
  0x16   :  { %2242 = vmatpush3.bf16.msra.mxu0 %v2239_v3  ;;  %2244 = vmatprep.subr.bf16.mxu1 %v2243_v6  ;;  %v2247_v10 = vpack.c.bf16 %v30_v9, %v29_v8  ;;  %v2251_v13 = vpack.c.bf16 %v32_v12, %v31_v11  ;;  %v1927_v14 = vld [vmem:[#allocation3 + $0xc8] ss:$0 sm:$0xff]  ;;  %v1930_v24 = vld [vmem:[#allocation3 + $0xc9] ss:$0 sm:$0xff]  ;;  %v44_v31 = vld [vmem:[#allocation3 + $0x98] sm:$0xff]  ;;  %v408_v43 = vand.u32 1, %v2494_v42 }
  0x17   :  { %2246 = vmatpush3.bf16.msra.mxu1 %v2243_v6  ;;  %v34_v22 = vld [vmem:[#allocation3 + $0x48] sm:$0xff]  ;;  %v45_v32 = vld [vmem:[#allocation3 + $0xa0] sm:$0xff]  ;;  %v47_v45 = vld [vmem:[#allocation3 + $0xb0] sm:$0xff]  ;;  %v406_v46 = vsub.s32 14, %v2494_v42  ;;  %v2524_v57 = vadd.s32 8, %v2494_v42  ;;  %v501_v4 = vand.u32 31, %v2503_v50 }
  0x18   :  { %2248 = vmatprep.subr.bf16.mxu1 %v2247_v10  ;;  %2252 = vmatprep.subr.bf16.mxu0 %v2251_v13  ;;  %v2255_v23 = vpack.c.bf16 %v34_v22, %v33_v21  ;;  %v2259_v33 = vpack.c.bf16 %v45_v32, %v44_v31  ;;  %v1933_v34 = vld [vmem:[#allocation3 + $0xca] ss:$0 sm:$0xff]  ;;  %v410_v47 = vmul.u32 2, %v408_v43  ;;  %v48_v52 = vld [vmem:[#allocation3 + $0xb8] sm:$0xff]  ;;  %v49_v53 = vld [vmem:[#allocation3 + $0xc0] sm:$0xff]  ;;  %vm726_vm8 = vcmask 125954  }
  0x19   :  { %2067 = vmatmul.mubr.msk.f32.vlgmr.msra.gmra.mrb[0].mxu0 %vm61_vm0, %v56_v7  ;;  %v46_v44 = vld [vmem:[#allocation3 + $0xa8] sm:$0xff]  ;;  %v2509_v56 = vpack.c.bf16 %v49_v53, %v48_v52  ;;  %v409_v58 = vand.u32 1, %v2524_v57  ;;  %v407_v59 = vsub.s32 14, %v2524_v57  ;;  %vm502_vm5 = vcmp.lt.s32.totalorder %v501_v4, 16 }
  0x1a   :  { %2254 = vmatpush3.bf16.msra.mxu0 %v2251_v13  ;;  %v2500_v48 = vpack.c.bf16 %v47_v45, %v46_v44  ;;  %v412_v51 = vadd.s32 %v410_v47, %v406_v46  ;;  %v1942_v5 = vld [vmem:[#allocation3 + $0xcc] ss:$0 sm:$0xff]  ;;  %vm728_vm9 = vcmask 257154   ;;  %vm954_vm10 = vcmask 130054  }
  0x1b   :  { %2250 = vmatpush3.bf16.msra.mxu1 %v2247_v10  ;;  %2256 = vmatprep.subr.bf16.mxu0 %v2255_v23  ;;  %v411_v60 = vmul.u32 2, %v409_v58  ;;  %vm956_vm11 = vcmask 261254   ;;  %vm840_vm12 = vcmask 128004   ;;  %vm842_vm13 = vcmask 259204  }
  0x1c   :  { %2260 = vmatprep.subr.bf16.mxu1 %v2259_v33  ;;  %vm414_vm2 = vcmp.eq.s32.totalorder %v2503_v50, %v412_v51  ;;  %vm1570_vm14 = vcmask 31744  }
  0x1d   :  { %v1938_v55 = vsel %vm414_vm2, 1.0, %v2449_v54  ;;  %v413_v61 = vadd.s32 %v411_v60, %v407_v59  ;;  %vm1673_vm2 = vcmask 15360  }
  0x1e   :  { %2258 = vmatpush3.bf16.msra.mxu0 %v2255_v23 }
  0x1f   :  { %vm415_vm4 = vcmp.eq.s32.totalorder %v2503_v50, %v413_v61 }
  0x20   :  { %v1939_v1 = vsel %vm415_vm4, 1.0, %v2449_v54  ;;  %vm1595_vm4 = vcmp.eq.s32.totalorder %v409_v58, %v2503_v50 }
  0xec   :  { %v2068_v15 = vpop.f32.mrb[0].mxu0 }
  0xed   :  { %v140_v16 = vadd.f32 %v2068_v15, %v1927_v14  ;;  %v134_v17 = vpop.f32.mrb[1].mxu0 }
  0xee   :  { %v135_v18 = vadd.f32 %v1927_v14, %v134_v17 }
  0xef   :  { %v144_v20 = vmax.f32 %v140_v16, 0.0 }
  0xf0   :  { %v143_v19 = vmax.f32 %v135_v18, 0.0 }
  0xf2   :  { %2077 = vmatprep.mubr.msk.f32.mxu1 %vm149_vm1, %v143_v19 }
  0xf3   :  { %2078 = vmatmul.mubr.msk.f32.vlgmr.msra.gmra.mrb[0].mxu1 %vm149_vm1, %v144_v20 }
  0xf4   :  { %2262 = vmatpush3.bf16.msra.mxu1 %v2259_v33 }
  0xf5   :  { %2267 = vmatprep.subr.bf16.mxu1 %v2448_v49 }
 0x1c6   :  { %v2079_v25 = vpop.f32.mrb[0].mxu1 }
 0x1c7   :  { %v228_v26 = vadd.f32 %v2079_v25, %v1930_v24  ;;  %v222_v27 = vpop.f32.mrb[1].mxu1 }
 0x1c8   :  { %v223_v28 = vadd.f32 %v1930_v24, %v222_v27 }
 0x1c9   :  { %v232_v30 = vmax.f32 %v228_v26, 0.0 }
 0x1ca   :  { %v231_v29 = vmax.f32 %v223_v28, 0.0 }
 0x1cc   :  { %2088 = vmatprep.mubr.msk.f32.mxu0 %vm149_vm1, %v231_v29 }
 0x1cd   :  { %2089 = vmatmul.mubr.msk.f32.vlgmr.msra.gmra.mrb[2].mxu0 %vm149_vm1, %v232_v30 }
 0x1ce   :  { %2102 = vmatprep.mubr.msk.f32.mxu0 %vm61_vm0, %v1938_v55 }
 0x2a0   :  { %v2090_v35 = vpop.f32.mrb[2].mxu0 }
 0x2a1   :  { %v315_v36 = vadd.f32 %v2090_v35, %v1933_v34  ;;  %v309_v37 = vpop.f32.mrb[3].mxu0 }
 0x2a2   :  { %v310_v38 = vadd.f32 %v1933_v34, %v309_v37 }
 0x2a3   :  { %v319_v40 = vmax.f32 %v315_v36, 0.0 }
 0x2a4   :  { %v318_v39 = vmax.f32 %v310_v38, 0.0 }
 0x2a6   :  { %2095 = vmatprep.mubr.msk.f32.mxu1 %vm61_vm0, %v318_v39 }
 0x2a7   :  { %2096 = vmatmul.mubr.msk.f32.vlgmr.msra.gmra.mrb[2].mxu1 %vm61_vm0, %v319_v40 }
 0x2a8   :  { %2269 = vmatpush3.bf16.msra.mxu1 %v2500_v48  ;;  %2113 = vmatprep.mubr.msk.f32.mxu1 %vm2450_vm3, %v2449_v54 }
 0x2a9   :  { %2270 = vmatprep.subr.bf16.mxu1 %v2448_v49 }
 0x2ac   :  { %2272 = vmatpush3.bf16.msra.mxu1 %v2509_v56 }
 0x2ad   :  { %2279 = vmatprep.subr.bf16.mxu1 %v2448_v49 }
 0x2af   :  { %2114 = vmatmul.mubr.f32.vlgmr.msra.gmra.mrb[4].mxu1 %v2449_v54 }
 0x2b0   :  { %2281 = vmatpush3.bf16.msra.mxu1 %v2500_v48  ;;  %2135 = vmatprep.mubr.msk.f32.mxu1 %vm2450_vm3, %v2449_v54 }
 0x2b1   :  { %2282 = vmatprep.subr.bf16.mxu1 %v2448_v49 }
 0x2b4   :  { %2284 = vmatpush3.bf16.msra.mxu1 %v2509_v56 }
 0x2b5   :  { %2291 = vmatprep.subr.bf16.mxu1 %v2448_v49 }
 0x37a   :  { %v2097_v62 = vpop.f32.mrb[2].mxu1 }
 0x37b   :  { %v392_v63 = vpop.f32.mrb[3].mxu1 }
 0x37c   :  { %v2263_v0 = vpack.c.bf16 %v2097_v62, %v392_v63 }
 0x37e   :  { %2264 = vmatprep.subr.bf16.mxu0 %v2263_v0 }
 0x37f   :  { %2266 = vmatpush3.bf16.msra.mxu0 %v2263_v0 }
 0x380   :  { %2273 = vmatprep.subr.bf16.mxu0 %v2448_v49 }
 0x382   :  { %2103 = vmatmul.mubr.msk.f32.vlgmr.msra.gmra.mrb[4].mxu0 %vm61_vm0, %v1939_v1  ;;  %v582_v2 = vpop.f32.mrb[4].mxu1 }
 0x383   :  { %2275 = vmatpush3.bf16.msra.mxu0 %v2500_v48  ;;  %2124 = vmatprep.mubr.msk.f32.mxu0 %vm2450_vm3, %v2449_v54  ;;  %v2115_v3 = vpop.f32.mrb[5].mxu1 }
 0x384   :  { %2276 = vmatprep.subr.bf16.mxu0 %v2448_v49 }
 0x387   :  { %2278 = vmatpush3.bf16.msra.mxu0 %v2509_v56 }
 0x388   :  { %2285 = vmatprep.subr.bf16.mxu0 %v2448_v49 }
 0x455   :  { %v2104_v6 = vpop.f32.mrb[4].mxu0 }
 0x456   :  { %v506_v7 = vsel %vm502_vm5, %v2097_v62, %v2104_v6  ;;  %v492_v8 = vpop.f32.mrb[5].mxu0 }
 0x457   :  { %v2541_v9 = vadd.f32 %v1942_v5, %v506_v7  ;;  %v505_v10 = vsel %vm502_vm5, %v392_v63, %v492_v8  ;;  %vm1680_vm5 = vcmask 1041408  }
 0x458   :  { %v2543_v11 = vadd.f32 %v1942_v5, %v505_v10 }
 0x45a   :  { %v586_v12 = vadd.f32 %v582_v2, %v2543_v11 }
 0x45c   :  { %2345 = vtanh.f32 %v586_v12  ;;  %v1943_v14 = vmul.f32 -1.442695, %v586_v12 }
 0x45e   :  { %2347 = vpow2.f32 %v1943_v14 }
 0x466   :  { %v2346_v13 = vpop.eup %2345 }
 0x467   :  { %596 = vrot.lane.b32.xlu0 %v2346_v13, %s2451_s0 }
 0x468   :  { %v2348_v15 = vpop.eup %2347 }
 0x469   :  { %v590_v16 = vadd.f32 1.0, %v2348_v15 }
 0x46b   :  { %2349 = vrcp.f32 %v590_v16 }
 0x475   :  { %v2350_v17 = vpop.eup %2349 }
 0x476   :  { %v594_v20 = vmul.f32 0.0, %v2350_v17 }
 0x4d9   :  { %v597_v18 = vpop.permute.xlu0 %596 }
 0x4da   :  { %v599_v19 = vmul.f32 %v2350_v17, %v597_v18 }
 0x4dc   :  { %601 = vrot.lane.b32.xlu0 %v599_v19, %s2451_s0 }
 0x54e   :  { %v602_v21 = vpop.permute.xlu0 %601 }
 0x54f   :  { %v604_v22 = vadd.f32 %v602_v21, %v594_v20 }
 0x551   :  { %2351 = vtanh.f32 %v604_v22  ;;  %v703_v38 = vrot.slane %v604_v22, 6 }
 0x55b   :  { %v2352_v23 = vpop.eup %2351 }
 0x55c   :  { %607 = vrot.lane.b32.xlu1 %v2352_v23, %s2451_s0 }
 0x5ce   :  { %v608_v24 = vpop.permute.xlu1 %607 }
 0x5cf   :  { %v610_v25 = vmul.f32 %v2350_v17, %v608_v24 }
 0x5d1   :  { %612 = vrot.lane.b32.xlu1 %v610_v25, %s2452_s1 }
 0x643   :  { %v613_v26 = vpop.permute.xlu1 %612 }
 0x644   :  { %616 = vst.msk [vmem:[#allocation2] sm:$0x3] %vm615_vm6, %v613_v26  ;;  %2125 = vmatmul.mubr.msk.f32.vlgmr.msra.gmra.mrb[6].mxu0 %vm149_vm1, %v613_v26 }
 0x645   :  { %618 = vst.msk [vmem:[#allocation2 + $0xe] sm:$0x3] %vm617_vm7, %v613_v26  ;;  %2287 = vmatpush3.bf16.msra.mxu0 %v2500_v48  ;;  %2146 = vmatprep.mubr.msk.f32.mxu0 %vm2450_vm3, %v2449_v54 }
 0x646   :  { %2288 = vmatprep.subr.bf16.mxu0 %v2448_v49 }
 0x649   :  { %2290 = vmatpush3.bf16.msra.mxu0 %v2509_v56 }
 0x64a   :  { %2297 = vmatprep.subr.bf16.mxu0 %v2448_v49 }
 0x717   :  { %v687_v27 = vpop.f32.mrb[6].mxu0 }
 0x718   :  { %v692_v28 = vrot.slane %v687_v27, 6  ;;  %v2126_v29 = vpop.f32.mrb[7].mxu0 }
 0x71a   :  { %v694_v30 = vadd.f32 %v692_v28, %v2543_v11 }
 0x71c   :  { %2353 = vtanh.f32 %v694_v30  ;;  %v1945_v32 = vmul.f32 -1.442695, %v694_v30 }
 0x71e   :  { %2355 = vpow2.f32 %v1945_v32 }
 0x726   :  { %v2354_v31 = vpop.eup %2353 }
 0x727   :  { %707 = vrot.lane.b32.xlu0 %v2354_v31, %s2451_s0 }
 0x728   :  { %v2356_v33 = vpop.eup %2355 }
 0x729   :  { %v698_v34 = vadd.f32 1.0, %v2356_v33 }
 0x72b   :  { %2357 = vrcp.f32 %v698_v34 }
 0x735   :  { %v2358_v35 = vpop.eup %2357 }
 0x736   :  { %v705_v39 = vmul.f32 %v2358_v35, %v703_v38 }
 0x799   :  { %v708_v36 = vpop.permute.xlu0 %707 }
 0x79a   :  { %v710_v37 = vmul.f32 %v2358_v35, %v708_v36 }
 0x79c   :  { %712 = vrot.lane.b32.xlu1 %v710_v37, %s2451_s0 }
 0x80e   :  { %v713_v40 = vpop.permute.xlu1 %712 }
 0x80f   :  { %v715_v41 = vadd.f32 %v713_v40, %v705_v39 }
 0x811   :  { %2359 = vtanh.f32 %v715_v41  ;;  %v817_v3 = vrot.slane %v715_v41, 6 }
 0x81b   :  { %v2360_v44 = vpop.eup %2359 }
 0x81c   :  { %718 = vrot.lane.b32.xlu0 %v2360_v44, %s2451_s0 }
 0x88e   :  { %v719_v45 = vpop.permute.xlu0 %718 }
 0x88f   :  { %v2563_v46 = vmul.f32 %v2358_v35, %v719_v45 }
 0x891   :  { %v730_v47 = vrot.slane %v2563_v46, 2 }
 0x893   :  { %731 = vrot.lane.b32.xlu1 %v730_v47, %s2452_s1 }
 0x905   :  { %v732_v51 = vpop.permute.xlu1 %731 }
 0x906   :  { %2136 = vmatmul.mubr.msk.f32.vlgmr.msra.gmra.mrb[6].mxu1 %vm149_vm1, %v732_v51 }
 0x907   :  { %2293 = vmatpush3.bf16.msra.mxu1 %v2500_v48  ;;  %2157 = vmatprep.mubr.msk.f32.mxu1 %vm2450_vm3, %v2449_v54 }
 0x908   :  { %2294 = vmatprep.subr.bf16.mxu1 %v2448_v49 }
 0x90b   :  { %2296 = vmatpush3.bf16.msra.mxu1 %v2509_v56 }
 0x90c   :  { %2303 = vmatprep.subr.bf16.mxu1 %v2448_v49 }
 0x9d9   :  { %v801_v52 = vpop.f32.mrb[6].mxu1 }
 0x9da   :  { %v806_v53 = vrot.slane %v801_v52, 4  ;;  %v2137_v55 = vpop.f32.mrb[7].mxu1 }
 0x9dc   :  { %v808_v59 = vadd.f32 %v806_v53, %v2543_v11 }
 0x9de   :  { %2361 = vtanh.f32 %v808_v59  ;;  %v1947_v61 = vmul.f32 -1.442695, %v808_v59 }
 0x9e0   :  { %2363 = vpow2.f32 %v1947_v61 }
 0x9e8   :  { %v2362_v60 = vpop.eup %2361 }
 0x9e9   :  { %821 = vrot.lane.b32.xlu0 %v2362_v60, %s2451_s0 }
 0x9ea   :  { %v2364_v62 = vpop.eup %2363 }
 0x9eb   :  { %v812_v63 = vadd.f32 1.0, %v2364_v62 }
 0x9ed   :  { %2365 = vrcp.f32 %v812_v63 }
 0x9f7   :  { %v2366_v0 = vpop.eup %2365 }
 0x9f8   :  { %v819_v4 = vmul.f32 %v2366_v0, %v817_v3 }
 0xa5b   :  { %v822_v1 = vpop.permute.xlu0 %821 }
 0xa5c   :  { %v824_v2 = vmul.f32 %v2366_v0, %v822_v1 }
 0xa5e   :  { %826 = vrot.lane.b32.xlu1 %v824_v2, %s2451_s0 }
 0xad0   :  { %v827_v5 = vpop.permute.xlu1 %826 }
 0xad1   :  { %v829_v6 = vadd.f32 %v827_v5, %v819_v4 }
 0xad3   :  { %2367 = vtanh.f32 %v829_v6  ;;  %v931_v25 = vrot.slane %v829_v6, 6 }
 0xadd   :  { %v2368_v7 = vpop.eup %2367 }
 0xade   :  { %832 = vrot.lane.b32.xlu0 %v2368_v7, %s2451_s0 }
 0xb50   :  { %v833_v8 = vpop.permute.xlu0 %832 }
 0xb51   :  { %v2578_v10 = vmul.f32 %v2366_v0, %v833_v8 }
 0xb53   :  { %v844_v12 = vrot.slane %v2578_v10, 4 }
 0xb55   :  { %845 = vrot.lane.b32.xlu1 %v844_v12, %s2452_s1 }
 0xbc7   :  { %v846_v13 = vpop.permute.xlu1 %845 }
 0xbc8   :  { %2147 = vmatmul.mubr.msk.f32.vlgmr.msra.gmra.mrb[8].mxu0 %vm149_vm1, %v846_v13 }
 0xbc9   :  { %2299 = vmatpush3.bf16.msra.mxu0 %v2500_v48  ;;  %2168 = vmatprep.mubr.msk.f32.mxu0 %vm2450_vm3, %v2449_v54 }
 0xbca   :  { %2300 = vmatprep.subr.bf16.mxu0 %v2448_v49 }
 0xbcd   :  { %2302 = vmatpush3.bf16.msra.mxu0 %v2509_v56 }
 0xbce   :  { %2309 = vmatprep.subr.bf16.mxu0 %v2448_v49 }
 0xc9b   :  { %v915_v14 = vpop.f32.mrb[8].mxu0 }
 0xc9c   :  { %v920_v15 = vrot.slane %v915_v14, 2  ;;  %v2148_v16 = vpop.f32.mrb[9].mxu0 }
 0xc9e   :  { %v922_v17 = vadd.f32 %v920_v15, %v2543_v11 }
 0xca0   :  { %2369 = vtanh.f32 %v922_v17  ;;  %v1949_v19 = vmul.f32 -1.442695, %v922_v17 }
 0xca2   :  { %2371 = vpow2.f32 %v1949_v19 }
 0xcaa   :  { %v2370_v18 = vpop.eup %2369 }
 0xcab   :  { %935 = vrot.lane.b32.xlu0 %v2370_v18, %s2451_s0 }
 0xcac   :  { %v2372_v20 = vpop.eup %2371 }
 0xcad   :  { %v926_v21 = vadd.f32 1.0, %v2372_v20 }
 0xcaf   :  { %2373 = vrcp.f32 %v926_v21 }
 0xcb9   :  { %v2374_v22 = vpop.eup %2373 }
 0xcba   :  { %v933_v26 = vmul.f32 %v2374_v22, %v931_v25 }
 0xd1d   :  { %v936_v23 = vpop.permute.xlu0 %935 }
 0xd1e   :  { %v938_v24 = vmul.f32 %v2374_v22, %v936_v23 }
 0xd20   :  { %940 = vrot.lane.b32.xlu1 %v938_v24, %s2451_s0 }
 0xd92   :  { %v941_v27 = vpop.permute.xlu1 %940 }
 0xd93   :  { %v943_v28 = vadd.f32 %v941_v27, %v933_v26 }
 0xd95   :  { %2375 = vtanh.f32 %v943_v28  ;;  %v1042_v45 = vrot.slane %v943_v28, 6 }
 0xd9f   :  { %v2376_v11 = vpop.eup %2375 }
 0xda0   :  { %946 = vrot.lane.b32.xlu0 %v2376_v11, %s2451_s0 }
 0xe12   :  { %v947_v29 = vpop.permute.xlu0 %946 }
 0xe13   :  { %v2593_v30 = vmul.f32 %v2374_v22, %v947_v29 }
 0xe15   :  { %v958_v31 = vrot.slane %v2593_v30, 6 }
 0xe17   :  { %959 = vrot.lane.b32.xlu1 %v958_v31, %s2452_s1 }
 0xe89   :  { %v960_v32 = vpop.permute.xlu1 %959 }
 0xe8a   :  { %2158 = vmatmul.mubr.msk.f32.vlgmr.msra.gmra.mrb[8].mxu1 %vm149_vm1, %v960_v32 }
 0xe8b   :  { %2305 = vmatpush3.bf16.msra.mxu1 %v2500_v48  ;;  %2179 = vmatprep.mubr.msk.f32.mxu1 %vm2450_vm3, %v2449_v54 }
 0xe8c   :  { %2306 = vmatprep.subr.bf16.mxu1 %v2448_v49 }
 0xe8f   :  { %2308 = vmatpush3.bf16.msra.mxu1 %v2509_v56 }
 0xf5d   :  { %v1029_v33 = vpop.f32.mrb[8].mxu1 }
 0xf5e   :  { %v1033_v34 = vadd.f32 %v1029_v33, %v2541_v9  ;;  %v2159_v35 = vpop.f32.mrb[9].mxu1 }
 0xf60   :  { %2377 = vtanh.f32 %v1033_v34  ;;  %v1951_v37 = vmul.f32 -1.442695, %v1033_v34 }
 0xf62   :  { %2379 = vpow2.f32 %v1951_v37 }
 0xf6a   :  { %v2378_v36 = vpop.eup %2377 }
 0xf6b   :  { %1046 = vrot.lane.b32.xlu0 %v2378_v36, %s2451_s0 }
 0xf6c   :  { %v2380_v38 = vpop.eup %2379 }
 0xf6d   :  { %v1037_v39 = vadd.f32 1.0, %v2380_v38 }
 0xf6f   :  { %2381 = vrcp.f32 %v1037_v39 }
 0xf79   :  { %v2382_v40 = vpop.eup %2381 }
 0xf7a   :  { %v1044_v47 = vmul.f32 %v2382_v40, %v1042_v45 }
 0xfdd   :  { %v1047_v41 = vpop.permute.xlu0 %1046 }
 0xfde   :  { %v1049_v44 = vmul.f32 %v2382_v40, %v1047_v41 }
 0xfe0   :  { %1051 = vrot.lane.b32.xlu1 %v1049_v44, %s2451_s0 }
0x1052   :  { %v1052_v51 = vpop.permute.xlu1 %1051 }
0x1053   :  { %v1054_v52 = vadd.f32 %v1052_v51, %v1044_v47 }
0x1055   :  { %2383 = vtanh.f32 %v1054_v52 }
0x105f   :  { %v2384_v53 = vpop.eup %2383 }
0x1060   :  { %1057 = vrot.lane.b32.xlu0 %v2384_v53, %s2451_s0 }
0x10d2   :  { %v1058_v55 = vpop.permute.xlu0 %1057 }
0x10d3   :  { %v1060_v59 = vmul.f32 %v2382_v40, %v1058_v55 }
0x10d5   :  { %1062 = vrot.lane.b32.xlu1 %v1060_v59, %s2452_s1 }
0x1147   :  { %v2608_v60 = vpop.permute.xlu1 %1062 }
0x1148   :  { %2169 = vmatmul.mubr.msk.f32.vlgmr.msra.gmra.mrb[10].mxu0 %vm149_vm1, %v2608_v60 }
0x1149   :  { %2311 = vmatpush3.bf16.msra.mxu0 %v2500_v48  ;;  %2190 = vmatprep.mubr.msk.f32.mxu0 %vm2450_vm3, %v2449_v54 }
0x114a   :  { %2312 = vmatprep.subr.bf16.mxu0 %v2448_v49 }
0x114d   :  { %2314 = vmatpush3.bf16.msra.mxu0 %v2509_v56  ;;  %v1151_v56 = vrot.slane %v1054_v52, 6 }
0x121b   :  { %v1135_v61 = vpop.f32.mrb[10].mxu0 }
0x121c   :  { %v1140_v62 = vrot.slane %v1135_v61, 6  ;;  %v2170_v63 = vpop.f32.mrb[11].mxu0 }
0x121e   :  { %v1142_v0 = vadd.f32 %v1140_v62, %v2541_v9 }
0x1220   :  { %2385 = vtanh.f32 %v1142_v0  ;;  %v1953_v2 = vmul.f32 -1.442695, %v1142_v0 }
0x1222   :  { %2387 = vpow2.f32 %v1953_v2  ;;  %v36_v2 = vld [vmem:[#allocation3 + $0x58] sm:$0xff] }
0x122a   :  { %v2386_v1 = vpop.eup %2385 }
0x122b   :  { %1155 = vrot.lane.b32.xlu0 %v2386_v1, %s2451_s0  ;;  %v35_v1 = vld [vmem:[#allocation3 + $0x50] sm:$0xff] }
0x122c   :  { %v2388_v3 = vpop.eup %2387 }
0x122d   :  { %v1146_v48 = vadd.f32 1.0, %v2388_v3  ;;  %v2315_v3 = vpack.c.bf16 %v36_v2, %v35_v1 }
0x122f   :  { %2389 = vrcp.f32 %v1146_v48  ;;  %v38_v48 = vld [vmem:[#allocation3 + $0x68] sm:$0xff]  ;;  %2316 = vmatprep.subr.bf16.mxu1 %v2315_v3 }
0x1239   :  { %v2390_v4 = vpop.eup %2389 }
0x123a   :  { %v1153_v7 = vmul.f32 %v2390_v4, %v1151_v56 }
0x129d   :  { %v1156_v5 = vpop.permute.xlu0 %1155 }
0x129e   :  { %v1158_v6 = vmul.f32 %v2390_v4, %v1156_v5 }
0x12a0   :  { %1160 = vrot.lane.b32.xlu1 %v1158_v6, %s2451_s0 }
0x1312   :  { %v1161_v8 = vpop.permute.xlu1 %1160 }
0x1313   :  { %v1163_v12 = vadd.f32 %v1161_v8, %v1153_v7 }
0x1315   :  { %2391 = vtanh.f32 %v1163_v12  ;;  %v1263_v11 = vrot.slane %v1163_v12, 6 }
0x131f   :  { %v2392_v13 = vpop.eup %2391 }
0x1320   :  { %1166 = vrot.lane.b32.xlu0 %v2392_v13, %s2451_s0  ;;  %v39_v13 = vld [vmem:[#allocation3 + $0x70] sm:$0xff] }
0x1392   :  { %v1167_v14 = vpop.permute.xlu0 %1166 }
0x1393   :  { %v2621_v15 = vmul.f32 %v2390_v4, %v1167_v14  ;;  %v40_v14 = vld [vmem:[#allocation3 + $0x78] sm:$0xff] }
0x1395   :  { %v1176_v16 = vrot.slane %v2621_v15, 2 }
0x1397   :  { %1177 = vrot.lane.b32.xlu1 %v1176_v16, %s2452_s1  ;;  %v2323_v16 = vpack.c.bf16 %v40_v14, %v39_v13 }
0x1399   :  { %2324 = vmatprep.subr.bf16.mxu0 %v2323_v16 }
0x1409   :  { %v1178_v17 = vpop.permute.xlu1 %1177 }
0x140a   :  { %2180 = vmatmul.mubr.msk.f32.vlgmr.msra.gmra.mrb[10].mxu1 %vm149_vm1, %v1178_v17  ;;  %v42_v17 = vld [vmem:[#allocation3 + $0x88] sm:$0xff] }
0x140b   :  { %2318 = vmatpush3.bf16.msra.mxu1 %v2315_v3 }
0x14dd   :  { %v1247_v18 = vpop.f32.mrb[10].mxu1 }
0x14de   :  { %v1252_v19 = vrot.slane %v1247_v18, 4  ;;  %v2181_v20 = vpop.f32.mrb[11].mxu1 }
0x14e0   :  { %v1254_v21 = vadd.f32 %v1252_v19, %v2541_v9  ;;  %v1958_v19 = vld [vmem:[#allocation3 + $0xcb] ss:$0 sm:$0xff] }
0x14e2   :  { %2393 = vtanh.f32 %v1254_v21  ;;  %v1955_v23 = vmul.f32 -1.442695, %v1254_v21 }
0x14e4   :  { %2395 = vpow2.f32 %v1955_v23 }
0x14ec   :  { %v2394_v22 = vpop.eup %2393 }
0x14ed   :  { %1267 = vrot.lane.b32.xlu0 %v2394_v22, %s2451_s0 }
0x14ee   :  { %v2396_v24 = vpop.eup %2395 }
0x14ef   :  { %v1258_v25 = vadd.f32 1.0, %v2396_v24 }
0x14f1   :  { %2397 = vrcp.f32 %v1258_v25 }
0x14fb   :  { %v2398_v26 = vpop.eup %2397 }
0x14fc   :  { %v1265_v29 = vmul.f32 %v2398_v26, %v1263_v11 }
0x155f   :  { %v1268_v27 = vpop.permute.xlu0 %1267 }
0x1560   :  { %v1270_v28 = vmul.f32 %v2398_v26, %v1268_v27 }
0x1562   :  { %1272 = vrot.lane.b32.xlu1 %v1270_v28, %s2451_s0 }
0x15d4   :  { %v1273_v31 = vpop.permute.xlu1 %1272 }
0x15d5   :  { %v1275_v32 = vadd.f32 %v1273_v31, %v1265_v29 }
0x15d7   :  { %2399 = vtanh.f32 %v1275_v32 }
0x15e1   :  { %v2400_v33 = vpop.eup %2399 }
0x15e2   :  { %1278 = vrot.lane.b32.xlu0 %v2400_v33, %s2451_s0 }
0x1654   :  { %v1279_v34 = vpop.permute.xlu0 %1278 }
0x1655   :  { %v1281_v35 = vmul.f32 %v2398_v26, %v1279_v34 }
0x1657   :  { %v1288_v36 = vrot.slane %v1281_v35, 4 }
0x1659   :  { %1289 = vrot.lane.b32.xlu1 %v1288_v36, %s2452_s1 }
0x16cb   :  { %v1290_v37 = vpop.permute.xlu1 %1289 }
0x16cc   :  { %2191 = vmatmul.mubr.msk.f32.vlgmr.msra.gmra.mrb[12].mxu0 %vm149_vm1, %v1290_v37 }
0x16cd   :  { %2326 = vmatpush3.bf16.msra.mxu0 %v2323_v16 }
0x179f   :  { %v1359_v38 = vpop.f32.mrb[12].mxu0 }
0x17a0   :  { %v1364_v39 = vrot.slane %v1359_v38, 2  ;;  %v2192_v40 = vpop.f32.mrb[13].mxu0 }
0x17a2   :  { %v1366_v41 = vadd.f32 %v1364_v39, %v2541_v9  ;;  %v1375_v9 = vrot.slane %v1275_v32, 6 }
0x17a4   :  { %2401 = vtanh.f32 %v1366_v41  ;;  %v1957_v45 = vmul.f32 -1.442695, %v1366_v41 }
0x17a6   :  { %2403 = vpow2.f32 %v1957_v45  ;;  %v1590_v45 = vand.u32 1, %v2503_v50 }
0x17a8   :  { %vm1591_vm15 = vcmp.eq.s32.totalorder %v1590_v45, %v2494_v42  ;;  %v43_v42 = vld [vmem:[#allocation3 + $0x90] sm:$0xf] }
0x17ae   :  { %v2402_v44 = vpop.eup %2401 }
0x17af   :  { %1379 = vrot.lane.b32.xlu0 %v2402_v44, %s2451_s0 }
0x17b0   :  { %v2404_v47 = vpop.eup %2403 }
0x17b1   :  { %v1370_v51 = vadd.f32 1.0, %v2404_v47 }
0x17b3   :  { %2405 = vrcp.f32 %v1370_v51 }
0x17bd   :  { %v2406_v52 = vpop.eup %2405 }
0x17be   :  { %v1377_v59 = vmul.f32 %v2406_v52, %v1375_v9 }
0x1821   :  { %v1380_v53 = vpop.permute.xlu0 %1379 }
0x1822   :  { %v1382_v55 = vmul.f32 %v2406_v52, %v1380_v53  ;;  %v1963_v53 = vsel %vm1591_vm15, 1.0, %v2449_v54 }
0x1824   :  { %1384 = vrot.lane.b32.xlu1 %v1382_v55, %s2451_s0 }
0x1828   :  { %723 = vrot.lane.b32.xlu1 %v2563_v46, %s2452_s1 }
0x182c   :  { %951 = vrot.lane.b32.xlu1 %v2593_v30, %s2452_s1 }
0x1830   :  { %1283 = vrot.lane.b32.xlu1 %v1281_v35, %s2452_s1 }
0x1896   :  { %v1385_v61 = vpop.permute.xlu1 %1384 }
0x1897   :  { %v1387_v62 = vadd.f32 %v1385_v61, %v1377_v59  ;;  %v1965_v59 = vsel %vm1595_vm4, 1.0, %v2449_v54 }
0x1899   :  { %2407 = vtanh.f32 %v1387_v62 }
0x189a   :  { %v724_v63 = vpop.permute.xlu1 %723 }
0x189b   :  { %727 = vst.msk [vmem:[#allocation2] sm:$0xc] %vm726_vm8, %v724_v63 }
0x189c   :  { %729 = vst.msk [vmem:[#allocation2 + $0xa] sm:$0xc] %vm728_vm9, %v724_v63 }
0x189e   :  { %v952_v46 = vpop.permute.xlu1 %951 }
0x189f   :  { %955 = vst.msk [vmem:[#allocation2] sm:$0xc0] %vm954_vm10, %v952_v46 }
0x18a0   :  { %957 = vst.msk [vmem:[#allocation2 + $0x2] sm:$0xc0] %vm956_vm11, %v952_v46 }
0x18a1   :  { %1065 = vst.msk [vmem:[#allocation2 + $0x8] sm:$0x3] %vm615_vm6, %v2608_v60  ;;  %vm1769_vm6 = vcmask 1043456  }
0x18a2   :  { %1066 = vst.msk [vmem:[#allocation2 + $0x6] sm:$0x3] %vm617_vm7, %v2608_v60  ;;  %v1284_v30 = vpop.permute.xlu1 %1283  ;;  %v37_v60 = vld [vmem:[#allocation3 + $0x60] sm:$0xff] }
0x18a3   :  { %v2408_v0 = vpop.eup %2407  ;;  %1286 = vst.msk [vmem:[#allocation2 + $0x8] sm:$0x30] %vm840_vm12, %v1284_v30  ;;  %v2319_v4 = vpack.c.bf16 %v38_v48, %v37_v60 }
0x18a4   :  { %1287 = vst.msk [vmem:[#allocation2 - $0x2] sm:$0x30] %vm842_vm13, %v1284_v30  ;;  %1390 = vrot.lane.b32.xlu0 %v2408_v0, %s2451_s0 }
0x18a5   :  { %2320 = vmatprep.subr.bf16.mxu1 %v2319_v4 }
0x18a6   :  { %2322 = vmatpush3.bf16.msra.mxu1 %v2319_v4 }
0x18a7   :  { %2331 = vmatprep.subr.bf16.mxu1 %v2448_v49 }
0x18a8   :  { %837 = vrot.lane.b32.xlu0 %v2578_v10, %s2452_s1 }
0x18ac   :  { %1171 = vrot.lane.b32.xlu0 %v2621_v15, %s2452_s1  ;;  %v41_v15 = vld [vmem:[#allocation3 + $0x80] sm:$0xff] }
0x18ad   :  { %v2327_v18 = vpack.c.bf16 %v42_v17, %v41_v15 }
0x18af   :  { %2328 = vmatprep.subr.bf16.mxu0 %v2327_v18 }
0x18b0   :  { %2330 = vmatpush3.bf16.msra.mxu0 %v2327_v18 }
0x1916   :  { %v1391_v5 = vpop.permute.xlu0 %1390 }
0x1917   :  { %v1393_v6 = vmul.f32 %v2406_v52, %v1391_v5 }
0x1919   :  { %1395 = vrot.lane.b32.xlu0 %v1393_v6, %s2452_s1 }
0x191a   :  { %v838_v10 = vpop.permute.xlu0 %837 }
0x191b   :  { %841 = vst.msk [vmem:[#allocation2] sm:$0x30] %vm840_vm12, %v838_v10 }
0x191c   :  { %843 = vst.msk [vmem:[#allocation2 + $0x6] sm:$0x30] %vm842_vm13, %v838_v10 }
0x191e   :  { %v1172_v56 = vpop.permute.xlu0 %1171 }
0x191f   :  { %1174 = vst.msk [vmem:[#allocation2 + $0x8] sm:$0xc] %vm726_vm8, %v1172_v56 }
0x1920   :  { %1175 = vst.msk [vmem:[#allocation2 + $0x2] sm:$0xc] %vm728_vm9, %v1172_v56 }
0x198b   :  { %v1396_v7 = vpop.permute.xlu0 %1395 }
0x198c   :  { %1398 = vst.msk [vmem:[#allocation2 + $0x8] sm:$0xc0] %vm954_vm10, %v1396_v7 }
0x198d   :  { %1399 = vst.msk [vmem:[#allocation2 - $0x6] sm:$0xc0] %vm956_vm11, %v1396_v7 }
0x1993   :  { %v2665_v12 = vld [vmem:[#allocation2 + $0x8] sm:$0xff] }
0x1994   :  { %v2663_v8 = vld [vmem:[#allocation2] sm:$0xff] }
0x1995   :  { %2201 = vmatprep.mubr.msk.f32.mxu1 %vm149_vm1, %v2663_v8 }
0x1996   :  { %2202 = vmatmul.mubr.msk.f32.vlgmr.msra.gmra.mrb[12].mxu1 %vm149_vm1, %v2665_v12 }
0x1997   :  { %2219 = vmatprep.mubr.msk.f32.mxu1 %vm2450_vm3, %v2449_v54 }
0x1a69   :  { %v2203_v20 = vpop.f32.mrb[12].mxu1 }
0x1a6a   :  { %v1484_v21 = vadd.f32 %v2203_v20, %v1958_v19  ;;  %v1478_v22 = vpop.f32.mrb[13].mxu1 }
0x1a6b   :  { %v1479_v23 = vadd.f32 %v1958_v19, %v1478_v22 }
0x1a6d   :  { %2409 = vtanh.f32 %v1479_v23 }
0x1a6e   :  { %2411 = vtanh.f32 %v1484_v21 }
0x1a77   :  { %v2410_v24 = vpop.eup %2409 }
0x1a78   :  { %v2412_v25 = vpop.eup %2411  ;;  %2212 = vmatprep.mubr.msk.f32.mxu0 %vm149_vm1, %v2410_v24 }
0x1a79   :  { %2213 = vmatmul.mubr.msk.f32.vlgmr.msra.gmra.mrb[14].mxu0 %vm149_vm1, %v2412_v25  ;;  %vm1594_vm1 = vcmp.eq.s32.totalorder %v408_v43, %v2503_v50 }
0x1a7a   :  { %v1964_v55 = vsel %vm1594_vm1, 1.0, %v2449_v54 }
0x1a7b   :  { %2224 = vmatprep.mubr.msk.f32.mxu0 %vm1673_vm2, %v1964_v55 }
0x1b4c   :  { %v2214_v26 = vpop.f32.mrb[14].mxu0 }
0x1b4d   :  { %v1561_v27 = vpop.f32.mrb[15].mxu0  ;;  %v1574_v28 = vsel %vm1570_vm14, %v2214_v26, -inf }
0x1b4e   :  { %1575 = vmax.xlane.f32.xlu0 %v1574_v28  ;;  %v1571_v11 = vsel %vm1570_vm14, %v1561_v27, -inf }
0x1b4f   :  { %1572 = vmax.xlane.f32.xlu1 %v1571_v11 }
0x1bdb   :  { %v1576_v29 = vpop.xlane.xlu0 %1575 }
0x1bdc   :  { %v1573_v31 = vpop.xlane.xlu1 %1572 }
0x1bdd   :  { %v1577_v32 = vmax.f32 %v1573_v31, %v1576_v29 }
0x1bdf   :  { %v1578_v33 = vrot.slane %v1577_v32, 4 }
0x1be1   :  { %v1579_v34 = vmax.f32 %v1577_v32, %v1578_v33 }
0x1be3   :  { %v1580_v35 = vrot.slane %v1579_v34, 2 }
0x1be5   :  { %v1581_v36 = vmax.f32 %v1579_v34, %v1580_v35 }
0x1be7   :  { %v1582_v37 = vrot.slane %v1581_v36, 1 }
0x1be9   :  { %v1583_v38 = vmax.f32 %v1581_v36, %v1582_v37 }
0x1beb   :  { %v1584_v39 = vsub.f32 %v1561_v27, %v1583_v38  ;;  %v1585_v40 = vsub.f32 %v2214_v26, %v1583_v38 }
0x1bed   :  { %v1586_v41 = vmul.f32 1.442695, %v1584_v39  ;;  %v1588_v44 = vmul.f32 1.442695, %v1585_v40 }
0x1bef   :  { %2413 = vpow2.f32 %v1586_v41 }
0x1bf0   :  { %2415 = vpow2.f32 %v1588_v44 }
0x1bf9   :  { %v2414_v47 = vpop.eup %2413 }
0x1bfa   :  { %v2416_v51 = vpop.eup %2415 }
0x1bfb   :  { %v2332_v52 = vpack.c.bf16 %v2416_v51, %v2414_v47 }
0x1bfd   :  { %2333 = vmatpush3.bf16.msra.mxu1 %v2332_v52 }
0x1bfe   :  { %2227 = vmatprep.subr.msk.mxu1 %vm1769_vm6, %v43_v42 }
0x1c00   :  { %2220 = vmatmul.mubr.msk.f32.vlgmr.msra.gmra.mrb[14].mxu1 %vm61_vm0, %v1963_v53 }
0x1c01   :  { %2228 = vmatpush3.msk.msra.mxu1 %vm1769_vm6, %v43_v42 }
0x1cd3   :  { %v1669_v9 = vpop.f32.mrb[14].mxu1 }
0x1cd4   :  { %v2221_v61 = vpop.f32.mrb[15].mxu1  ;;  %2222 = vmatprep.subr.msk.mxu0 %vm1680_vm5, %v1669_v9 }
0x1cd5   :  { %2223 = vmatpush3.msk.msra.mxu0 %vm1680_vm5, %v1669_v9 }
0x1cd6   :  { %2225 = vmatmul.mubr.msk.f32.vlgmr.msra.gmra.mrb[16].mxu0 %vm1673_vm2, %v1965_v59  ;;  %2334 = vmatprep.subr.bf16.mxu0 %v2448_v49 }
0x1cd7   :  { %2236 = vmatprep.mubr.msk.f32.mxu0 %vm2450_vm3, %v2449_v54  ;;  %vm1920_vm3 = vcmask 254976  }
0x1da9   :  { %v2226_v43 = vpop.f32.mrb[16].mxu0 }
0x1daa   :  { %2417 = vrcp.f32 %v2226_v43  ;;  %v1750_v50 = vpop.f32.mrb[17].mxu0 }
0x1dab   :  { %2419 = vrcp.f32 %v1750_v50 }
0x1db4   :  { %v2418_v57 = vpop.eup %2417 }
0x1db5   :  { %v2420_v58 = vpop.eup %2419  ;;  %v1762_v63 = vmul.f32 %v2418_v57, %v2416_v51 }
0x1db6   :  { %v1760_v62 = vmul.f32 %v2420_v58, %v2414_v47 }
0x1db8   :  { %2229 = vmatprep.mubr.msk.f32.mxu1 %vm1570_vm14, %v1760_v62 }
0x1db9   :  { %2230 = vmatmul.mubr.msk.f32.vlgmr.msra.gmra.mrb[16].mxu1 %vm1570_vm14, %v1762_v63 }
0x1e8c   :  { %v2231_v49 = vpop.f32.mrb[16].mxu1 }
0x1e8d   :  { %v1849_v46 = vmul.f32 %v2231_v49, %v2665_v12  ;;  %v1839_v54 = vpop.f32.mrb[17].mxu1 }
0x1e8e   :  { %v1848_v30 = vmul.f32 %v1839_v54, %v2663_v8 }
0x1e90   :  { %v2335_v0 = vpack.c.bf16 %v1849_v46, %v1848_v30 }
0x1e92   :  { %2336 = vmatpush3.bf16.msra.mxu0 %v2335_v0 }
0x1e95   :  { %2237 = vmatmul.mubr.msk.f32.vlgmr.msra.gmra.mrb[18].mxu0 %vm61_vm0, %v1963_v53 }
0x1f68   :  { %v1916_v1 = vpop.f32.mrb[18].mxu0 }
0x1f69   :  { %1921 = vst.msk [vmem:[%s2702_s2] sm:$0x3] %vm1920_vm3, %v1916_v1  ;;  %v2238_v2 = vpop.f32.mrb[19].mxu0 }
0x1f6a   :  { %1926 = vsyncpa [#allocation4], 1 }

</bundles_post_ra>
